<compile_context>
chip_gen: v7x
topology: tpu7x:2x2x1
jax: 0.10.0
libtpu: 0.0.40
codegen_flags: <defaults>
</compile_context>

<pallas_src>
import jax
import jax.numpy as jnp
from jax import lax
from jax.experimental import pallas as pl
from jax.experimental.pallas import tpu as pltpu

N_SLOTS = 4  # fixed weight slots: [p0.factories, p0.units, p1.factories, p1.units]


# ----------------------------------------------------------------------------
# Segment layout: per-slot [lo, hi) row bounds in the packed sequence.
# Empty slots (a player with no units) get lo == hi.
# ----------------------------------------------------------------------------
def segment_layout(lengths):
    bounds, pos = [], 0
    for player in ("player_0", "player_1"):
        f = lengths[player]["factories"]
        bounds.append((pos, pos + f))
        pos += f
        u = lengths[player]["units"]
        bounds.append((pos, pos + u))
        pos += u
    return bounds, pos


def _round_up(x, m):
    return -(-x // m) * m


# ----------------------------------------------------------------------------
# Pack per-layer params into lane-dense fused tensors, stacked over depth.
#   w_all  (D, 4H, PADW): row block s = slot s weights, cols [Q heads|K heads|V heads|pad]
#   brow   (D, L, PADW) : per-row projection bias (row r gets its slot's bias)
#   wo_all (D*NH, H, H) : per-head output-linear weights
#   mask   (L, 4H)      : row->slot membership mask for the input expansion
# ----------------------------------------------------------------------------
def pack_params(layer_params, bounds, num_heads, H):
    NH = num_heads
    W3 = 3 * NH * H
    PADW = max(128, _round_up(W3, 128))
    L = bounds[-1][1]

    Ws, Brows, Wos, Bos, Gs, Bts = [], [], [], [], [], []
    for p in layer_params:
        row_blocks, slot_bias = [], []
        for s in range(N_SLOTS):
            wcols = [p[k][h, s] for k in ("wq", "wk", "wv") for h in range(NH)]
            bcols = [p[k][h, s] for k in ("bq", "bk", "bv") for h in range(NH)]
            row_blocks.append(jnp.concatenate(wcols, axis=-1))          # (H, W3)
            b = jnp.concatenate(bcols, axis=-1)                         # (1, W3)
            slot_bias.append(jnp.pad(b, ((0, 0), (0, PADW - W3))))      # (1, PADW)
        W = jnp.concatenate(row_blocks, axis=0)                         # (4H, W3)
        W = jnp.pad(W, ((0, 0), (0, PADW - W3)))                        # (4H, PADW)

        rows = []
        for s, (lo, hi) in enumerate(bounds):
            if hi > lo:
                rows.append(jnp.broadcast_to(slot_bias[s], (hi - lo, PADW)))
        Brow = jnp.concatenate(rows, axis=0)                            # (L, PADW)

        Ws.append(W)
        Brows.append(Brow)
        Wos.append(p["wo"])                                             # (NH, H, H)
        Bos.append(p["bo"])
        Gs.append(p["gamma"])
        Bts.append(p["beta"])

    w_all = jnp.stack(Ws)                                               # (D, 4H, PADW)
    brow_all = jnp.stack(Brows)                                         # (D, L, PADW)
    wo_all = jnp.concatenate(Wos, axis=0)                               # (D*NH, H, H)
    bo_all = jnp.stack(Bos)                                             # (D, 1, H)
    g_all = jnp.stack(Gs)                                               # (D, 1, H)
    bt_all = jnp.stack(Bts)                                             # (D, 1, H)

    # Row->slot membership mask (L, 4H): column block s is 1.0 for rows of slot s.
    row = jnp.arange(L, dtype=jnp.int32)[:, None]
    mask = jnp.concatenate(
        [jnp.broadcast_to(((row >= lo) & (row < hi)).astype(jnp.float32), (L, H))
         for (lo, hi) in bounds], axis=-1)                              # (L, 4H)

    return mask, w_all, brow_all, wo_all, bo_all, g_all, bt_all


# ----------------------------------------------------------------------------
# Fused kernel: one grid step = one batch element, all `depth` layers.
# ----------------------------------------------------------------------------
def _make_fused_kernel(depth, num_heads, hidden_dim, eps=1e-5):
    NH, H = num_heads, hidden_dim
    QO, KO, VO = 0, NH * H, 2 * NH * H
    inv_scale = 1.0 / (H ** 0.5)

    def kernel(seq_ref, mask_ref, w_ref, brow_ref, wo_ref, bo_ref, g_ref, bt_ref,
               out_ref):
        x = seq_ref[0]                       # (L, H)
        mask = mask_ref[...]                 # (L, 4H), loaded once

        # The whole depth stack of weights is VMEM-resident (<~1 MiB here), so
        # layers run back-to-back with x as a local carry: one launch, no
        # per-layer weight DMA, no cross-grid-step scratch.
        for d in range(depth):
            # Input-side segment select: x replicated per slot and zeroed
            # outside the slot's rows -> one matmul against the fused per-slot
            # weight gives every row its own segment's Q/K/V (bias added from
            # the precomputed per-row table), with no post-matmul masking.
            x_exp = jnp.concatenate([x] * N_SLOTS, axis=-1) * mask      # (L, 4H)
            proj = jnp.dot(x_exp, w_ref[d],
                           preferred_element_type=jnp.float32) + brow_ref[d]

            attn = None
            for h in range(NH):
                Q = proj[:, QO + h * H: QO + (h + 1) * H]
                K = proj[:, KO + h * H: KO + (h + 1) * H]
                V = proj[:, VO + h * H: VO + (h + 1) * H]
                # Contract on the last dims of both operands (no K transpose).
                S = lax.dot_general(Q, K, (((1,), (1,)), ((), ())),
                                    preferred_element_type=jnp.float32) * inv_scale
                S = S - jnp.max(S, axis=-1, keepdims=True)
                P = jnp.exp(S)
                inv_l = 1.0 / jnp.sum(P, axis=-1, keepdims=True)        # (L, 1)
                O = jnp.dot(P, V, preferred_element_type=jnp.float32) * inv_l
                # Accumulate head @ wo[h] instead of lane-concatenating heads.
                contrib = jnp.dot(O, wo_ref[d * NH + h],
                                  preferred_element_type=jnp.float32)
                attn = contrib if attn is None else attn + contrib

            # Residual + LayerNorm (biased variance, eps = 1e-5).
            y = x + attn + bo_ref[d]
            mu = jnp.mean(y, axis=-1, keepdims=True)
            yc = y - mu
            var = jnp.mean(yc * yc, axis=-1, keepdims=True)
            x = yc * lax.rsqrt(var + eps) * g_ref[d] + bt_ref[d]

        out_ref[0] = x

    return kernel


def fused_forward(seq, packed, num_heads):
    mask, w_all, brow_all, wo_all, bo_all, g_all, bt_all = packed
    B, L, H = seq.shape
    depth = w_all.shape[0]
    SegW = mask.shape[-1]
    PADW = w_all.shape[-1]
    kernel = _make_fused_kernel(depth, num_heads, H)

    full3 = lambda b: (0, 0, 0)   # weight stacks: same block on every grid step
    # TODO(synk): if depth * per-layer fused weights outgrows ~8 MiB (v7x VMEM
    # headroom), fall back to a (batch, depth) streaming grid with explicit
    # vmem_limit_bytes and pl.Buffered(3) on the weight BlockSpecs.
    return pl.pallas_call(
        kernel,
        out_shape=jax.ShapeDtypeStruct((B, L, H), jnp.float32),
        grid=(B,),
        in_specs=[
            pl.BlockSpec((1, L, H), lambda b: (b, 0, 0)),        # seq (per batch)
            pl.BlockSpec((L, SegW), lambda b: (0, 0)),           # row->slot mask
            pl.BlockSpec((depth, SegW, PADW), full3),            # fused QKV weights
            pl.BlockSpec((depth, L, PADW), full3),               # per-row QKV bias
            pl.BlockSpec((depth * num_heads, H, H), full3),      # wo (per head)
            pl.BlockSpec((depth, 1, H), full3),                  # bo
            pl.BlockSpec((depth, 1, H), full3),                  # gamma
            pl.BlockSpec((depth, 1, H), full3),                  # beta
        ],
        out_specs=pl.BlockSpec((1, L, H), lambda b: (b, 0, 0)),
        compiler_params=pltpu.CompilerParams(
            dimension_semantics=("parallel",)),   # batch -> the 2 TCs on v7x
    )(seq, mask, w_all, brow_all, wo_all, bo_all, g_all, bt_all)


# ----------------------------------------------------------------------------
# ResMHAttention forward (param packing & final dict split are plain-JAX glue)
# ----------------------------------------------------------------------------
def res_mh_attention(seq, lengths, layer_params, num_heads):
    bounds, L = segment_layout(lengths)
    assert L == seq.shape[1]
    H = seq.shape[2]
    packed = pack_params(layer_params, bounds, num_heads, H)
    seq = fused_forward(seq, packed, num_heads)

    state = {"player_0": {}, "player_1": {}}
    i = 0
    for player in ("player_0", "player_1"):
        f = lengths[player]["factories"]
        state[player]["factories"] = seq[:, i:i + f]
        i += f
        u = lengths[player]["units"]
        if u == 0:
            state[player]["units"] = {}
            continue
        state[player]["units"] = seq[:, i:i + u]
        i += u
    return state


# ----------------------------------------------------------------------------
# Pure-JAX reference (mirrors the PyTorch forward) for correctness checking
# ----------------------------------------------------------------------------
def _ref_layer(seq, params, bounds, num_heads):
    B, L, H = seq.shape
    scale = H ** 0.5
    head_outs = []
    for h in range(num_heads):
        Qs, Ks, Vs = [], [], []
        for slot, (lo, hi) in enumerate(bounds):
            if hi <= lo:
                continue
            xs = seq[:, lo:hi]
            Qs.append(xs @ params["wq"][h, slot] + params["bq"][h, slot])
            Ks.append(xs @ params["wk"][h, slot] + params["bk"][h, slot])
            Vs.append(xs @ params["wv"][h, slot] + params["bv"][h, slot])
        Q = jnp.concatenate(Qs, axis=1)
        K = jnp.concatenate(Ks, axis=1)
        V = jnp.concatenate(Vs, axis=1)
        S = jnp.einsum("bld,bmd->blm", Q, K) / scale
        P = jax.nn.softmax(S, axis=-1)
        head_outs.append(jnp.einsum("blm,bmd->bld", P, V))
    cat = jnp.concatenate(head_outs, axis=-1)
    wo_cat = params["wo"].reshape(num_heads * H, H)
    attn = cat @ wo_cat + params["bo"]
    y = seq + attn
    mu = y.mean(-1, keepdims=True)
    var = ((y - mu) ** 2).mean(-1, keepdims=True)
    return (y - mu) / jnp.sqrt(var + 1e-5) * params["gamma"] + params["beta"]


def _ref_forward(seq, layer_params, bounds, num_heads):
    for p in layer_params:
        seq = _ref_layer(seq, p, bounds, num_heads)
    return seq


# ----------------------------------------------------------------------------
# Deterministic parameter init (weights stored (in, out): projection = x @ W + b)
# ----------------------------------------------------------------------------
def init_params(key, depth, num_heads, hidden_dim):
    layer_params = []
    for d in range(depth):
        k = jax.random.fold_in(key, d)
        ks = jax.random.split(k, 8)
        sc = 1.0 / (hidden_dim ** 0.5)
        p = {
            "wq": jax.random.normal(ks[0], (num_heads, 4, hidden_dim, hidden_dim), jnp.float32) * sc,
            "bq": jax.random.normal(ks[1], (num_heads, 4, 1, hidden_dim), jnp.float32) * 0.1,
            "wk": jax.random.normal(ks[2], (num_heads, 4, hidden_dim, hidden_dim), jnp.float32) * sc,
            "bk": jax.random.normal(ks[3], (num_heads, 4, 1, hidden_dim), jnp.float32) * 0.1,
            "wv": jax.random.normal(ks[4], (num_heads, 4, hidden_dim, hidden_dim), jnp.float32) * sc,
            "bv": jax.random.normal(ks[5], (num_heads, 4, 1, hidden_dim), jnp.float32) * 0.1,
            "wo": jax.random.normal(ks[6], (num_heads, hidden_dim, hidden_dim), jnp.float32) * sc / num_heads,
            "bo": jax.random.normal(ks[7], (1, hidden_dim), jnp.float32) * 0.1,
            "gamma": jnp.ones((1, hidden_dim), jnp.float32),
            "beta": jnp.zeros((1, hidden_dim), jnp.float32),
        }
        layer_params.append(p)
    return layer_params


if __name__ == "__main__":
    B, H, num_heads, depth = 2, 32, 2, 2
    key = jax.random.PRNGKey(0)
    kseq, kpar, kseq2 = jax.random.split(key, 3)
    layer_params = init_params(kpar, depth, num_heads, H)

    # --- Case 1: both players have units (4 segments) -----------------------
    lengths = {"player_0": {"factories": 3, "units": 5},
               "player_1": {"factories": 3, "units": 5}}
    bounds, L = segment_layout(lengths)                 # L = 16
    seq = jax.random.normal(kseq, (B, L, H), jnp.float32)

    state = res_mh_attention(seq, lengths, layer_params, num_heads)
    state = jax.block_until_ready(state)

    got = jnp.concatenate(
        [state["player_0"]["factories"], state["player_0"]["units"],
         state["player_1"]["factories"], state["player_1"]["units"]], axis=1)
    ref = _ref_forward(seq, layer_params, bounds, num_heads)
    assert got.shape == (B, L, H)
    assert jnp.allclose(got, ref, atol=1e-4, rtol=1e-4), (
        float(jnp.max(jnp.abs(got - ref))))

    # --- Case 2: player_0 has no units (3 live segments, slot-mapping check) -
    lengths2 = {"player_0": {"factories": 4, "units": 0},
                "player_1": {"factories": 3, "units": 5}}
    bounds2, L2 = segment_layout(lengths2)              # L2 = 12
    seq2 = jax.random.normal(kseq2, (B, L2, H), jnp.float32)

    state2 = res_mh_attention(seq2, lengths2, layer_params, num_heads)
    state2 = jax.block_until_ready(state2)

    got2 = jnp.concatenate(
        [state2["player_0"]["factories"],
         state2["player_1"]["factories"], state2["player_1"]["units"]], axis=1)
    ref2 = _ref_forward(seq2, layer_params, bounds2, num_heads)
    assert got2.shape == (B, L2, H)
    assert jnp.allclose(got2, ref2, atol=1e-4, rtol=1e-4), (
        float(jnp.max(jnp.abs(got2 - ref2))))

    print("KERNEL_OK")
</pallas_src>

<mosaic_0001>
module attributes {stable_mosaic.version = 11 : i64} {
  func.func @kernel(%arg0: i32, %arg1: memref<1x16x32xf32, #tpu.memory_space<vmem>>, %arg2: memref<16x128xf32, #tpu.memory_space<vmem>>, %arg3: memref<2x128x256xf32, #tpu.memory_space<vmem>>, %arg4: memref<2x16x256xf32, #tpu.memory_space<vmem>>, %arg5: memref<4x32x32xf32, #tpu.memory_space<vmem>>, %arg6: memref<2x1x32xf32, #tpu.memory_space<vmem>>, %arg7: memref<2x1x32xf32, #tpu.memory_space<vmem>>, %arg8: memref<2x1x32xf32, #tpu.memory_space<vmem>>, %arg9: memref<1x16x32xf32, #tpu.memory_space<vmem>>) attributes {dimension_semantics = [#tpu.dimension_semantics<parallel>], iteration_bounds = array<i64: 2>, scalar_prefetch = 0 : i64, scratch_operands = 0 : i64, tpu.core_type = #tpu.core_type<tc>, window_params = [{transform_indices = @transform_0, window_bounds = array<i64: 1, 16, 32>}, {pipeline_mode = #tpu.pipeline_mode<synchronous>, transform_indices = @transform_1, window_bounds = array<i64: 16, 128>}, {pipeline_mode = #tpu.pipeline_mode<synchronous>, transform_indices = @transform_2, window_bounds = array<i64: 2, 128, 256>}, {pipeline_mode = #tpu.pipeline_mode<synchronous>, transform_indices = @transform_3, window_bounds = array<i64: 2, 16, 256>}, {pipeline_mode = #tpu.pipeline_mode<synchronous>, transform_indices = @transform_4, window_bounds = array<i64: 4, 32, 32>}, {pipeline_mode = #tpu.pipeline_mode<synchronous>, transform_indices = @transform_5, window_bounds = array<i64: 2, 1, 32>}, {pipeline_mode = #tpu.pipeline_mode<synchronous>, transform_indices = @transform_6, window_bounds = array<i64: 2, 1, 32>}, {pipeline_mode = #tpu.pipeline_mode<synchronous>, transform_indices = @transform_7, window_bounds = array<i64: 2, 1, 32>}, {transform_indices = @transform_8, window_bounds = array<i64: 1, 16, 32>}]} {
    %c0 = arith.constant 0 : index
    %c0_0 = arith.constant 0 : index
    %c0_1 = arith.constant 0 : index
    %0 = vector.load %arg1[%c0, %c0_0, %c0_1] : memref<1x16x32xf32, #tpu.memory_space<vmem>>, vector<1x16x32xf32>
    %1 = vector.shape_cast %0 : vector<1x16x32xf32> to vector<16x32xf32>
    %c0_2 = arith.constant 0 : index
    %c0_3 = arith.constant 0 : index
    %2 = vector.load %arg2[%c0_2, %c0_3] : memref<16x128xf32, #tpu.memory_space<vmem>>, vector<16x128xf32>
    %3 = tpu.concatenate %1, %1, %1, %1 in 1 : vector<16x32xf32>, vector<16x32xf32>, vector<16x32xf32>, vector<16x32xf32> -> vector<16x128xf32>
    %4 = arith.mulf %3, %2 : vector<16x128xf32>
    %c0_4 = arith.constant 0 : index
    %c0_5 = arith.constant 0 : index
    %c0_6 = arith.constant 0 : index
    %5 = vector.load %arg3[%c0_4, %c0_5, %c0_6] : memref<2x128x256xf32, #tpu.memory_space<vmem>>, vector<1x128x256xf32>
    %6 = vector.shape_cast %5 : vector<1x128x256xf32> to vector<128x256xf32>
    %cst = arith.constant dense<0.000000e+00> : vector<16x256xf32>
    %7 = tpu.matmul %4, %6, %cst {dimension_numbers = #tpu.dot_dimension_numbers<[1], [0], [0], [1], [0, 0, 1, 1], [], []>} : vector<16x128xf32>, vector<128x256xf32>, vector<16x256xf32> -> vector<16x256xf32>
    %c0_7 = arith.constant 0 : index
    %c0_8 = arith.constant 0 : index
    %c0_9 = arith.constant 0 : index
    %8 = vector.load %arg4[%c0_7, %c0_8, %c0_9] : memref<2x16x256xf32, #tpu.memory_space<vmem>>, vector<1x16x256xf32>
    %9 = vector.shape_cast %8 : vector<1x16x256xf32> to vector<16x256xf32>
    %10 = arith.addf %7, %9 : vector<16x256xf32>
    %11 = vector.extract_strided_slice %10 {offsets = [0, 0], sizes = [16, 32], strides = [1, 1]} : vector<16x256xf32> to vector<16x32xf32>
    %12 = vector.extract_strided_slice %10 {offsets = [0, 64], sizes = [16, 32], strides = [1, 1]} : vector<16x256xf32> to vector<16x32xf32>
    %13 = vector.extract_strided_slice %10 {offsets = [0, 128], sizes = [16, 32], strides = [1, 1]} : vector<16x256xf32> to vector<16x32xf32>
    %cst_10 = arith.constant dense<0.000000e+00> : vector<16x16xf32>
    %14 = tpu.matmul %11, %12, %cst_10 {dimension_numbers = #tpu.dot_dimension_numbers<[1], [1], [0], [0], [0, 0, 1, 0], [], []>} : vector<16x32xf32>, vector<16x32xf32>, vector<16x16xf32> -> vector<16x16xf32>
    %cst_11 = arith.constant 0.176776692 : f32
    %15 = vector.broadcast %cst_11 : f32 to vector<16x16xf32>
    %16 = arith.mulf %14, %15 : vector<16x16xf32>
    %cst_12 = arith.constant dense<0xFF800000> : vector<16xf32>
    %17 = vector.multi_reduction <maximumf>, %16, %cst_12 [1] : vector<16x16xf32> to vector<16xf32>
    %18 = vector.shape_cast %17 : vector<16xf32> to vector<16x1xf32>
    %19 = vector.broadcast %18 : vector<16x1xf32> to vector<16x16xf32>
    %20 = arith.subf %16, %19 : vector<16x16xf32>
    %21 = math.exp %20 : vector<16x16xf32>
    %cst_13 = arith.constant dense<0.000000e+00> : vector<16xf32>
    %22 = vector.multi_reduction <add>, %21, %cst_13 [1] : vector<16x16xf32> to vector<16xf32>
    %23 = vector.shape_cast %22 : vector<16xf32> to vector<16x1xf32>
    %cst_14 = arith.constant 1.000000e+00 : f32
    %24 = vector.broadcast %cst_14 : f32 to vector<16x1xf32>
    %25 = arith.divf %24, %23 : vector<16x1xf32>
    %cst_15 = arith.constant dense<0.000000e+00> : vector<16x32xf32>
    %26 = tpu.matmul %21, %13, %cst_15 {dimension_numbers = #tpu.dot_dimension_numbers<[1], [0], [0], [1], [0, 0, 1, 1], [], []>} : vector<16x16xf32>, vector<16x32xf32>, vector<16x32xf32> -> vector<16x32xf32>
    %27 = vector.broadcast %25 : vector<16x1xf32> to vector<16x32xf32>
    %28 = arith.mulf %26, %27 : vector<16x32xf32>
    %c0_16 = arith.constant 0 : index
    %c0_17 = arith.constant 0 : index
    %c0_18 = arith.constant 0 : index
    %29 = vector.load %arg5[%c0_16, %c0_17, %c0_18] : memref<4x32x32xf32, #tpu.memory_space<vmem>>, vector<1x32x32xf32>
    %30 = vector.shape_cast %29 : vector<1x32x32xf32> to vector<32x32xf32>
    %cst_19 = arith.constant dense<0.000000e+00> : vector<16x32xf32>
    %31 = tpu.matmul %28, %30, %cst_19 {dimension_numbers = #tpu.dot_dimension_numbers<[1], [0], [0], [1], [0, 0, 1, 1], [], []>} : vector<16x32xf32>, vector<32x32xf32>, vector<16x32xf32> -> vector<16x32xf32>
    %32 = vector.extract_strided_slice %10 {offsets = [0, 32], sizes = [16, 32], strides = [1, 1]} : vector<16x256xf32> to vector<16x32xf32>
    %33 = vector.extract_strided_slice %10 {offsets = [0, 96], sizes = [16, 32], strides = [1, 1]} : vector<16x256xf32> to vector<16x32xf32>
    %34 = vector.extract_strided_slice %10 {offsets = [0, 160], sizes = [16, 32], strides = [1, 1]} : vector<16x256xf32> to vector<16x32xf32>
    %cst_20 = arith.constant dense<0.000000e+00> : vector<16x16xf32>
    %35 = tpu.matmul %32, %33, %cst_20 {dimension_numbers = #tpu.dot_dimension_numbers<[1], [1], [0], [0], [0, 0, 1, 0], [], []>} : vector<16x32xf32>, vector<16x32xf32>, vector<16x16xf32> -> vector<16x16xf32>
    %cst_21 = arith.constant 0.176776692 : f32
    %36 = vector.broadcast %cst_21 : f32 to vector<16x16xf32>
    %37 = arith.mulf %35, %36 : vector<16x16xf32>
    %cst_22 = arith.constant dense<0xFF800000> : vector<16xf32>
    %38 = vector.multi_reduction <maximumf>, %37, %cst_22 [1] : vector<16x16xf32> to vector<16xf32>
    %39 = vector.shape_cast %38 : vector<16xf32> to vector<16x1xf32>
    %40 = vector.broadcast %39 : vector<16x1xf32> to vector<16x16xf32>
    %41 = arith.subf %37, %40 : vector<16x16xf32>
    %42 = math.exp %41 : vector<16x16xf32>
    %cst_23 = arith.constant dense<0.000000e+00> : vector<16xf32>
    %43 = vector.multi_reduction <add>, %42, %cst_23 [1] : vector<16x16xf32> to vector<16xf32>
    %44 = vector.shape_cast %43 : vector<16xf32> to vector<16x1xf32>
    %cst_24 = arith.constant 1.000000e+00 : f32
    %45 = vector.broadcast %cst_24 : f32 to vector<16x1xf32>
    %46 = arith.divf %45, %44 : vector<16x1xf32>
    %cst_25 = arith.constant dense<0.000000e+00> : vector<16x32xf32>
    %47 = tpu.matmul %42, %34, %cst_25 {dimension_numbers = #tpu.dot_dimension_numbers<[1], [0], [0], [1], [0, 0, 1, 1], [], []>} : vector<16x16xf32>, vector<16x32xf32>, vector<16x32xf32> -> vector<16x32xf32>
    %48 = vector.broadcast %46 : vector<16x1xf32> to vector<16x32xf32>
    %49 = arith.mulf %47, %48 : vector<16x32xf32>
    %c1 = arith.constant 1 : index
    %c0_26 = arith.constant 0 : index
    %c0_27 = arith.constant 0 : index
    %50 = vector.load %arg5[%c1, %c0_26, %c0_27] : memref<4x32x32xf32, #tpu.memory_space<vmem>>, vector<1x32x32xf32>
    %51 = vector.shape_cast %50 : vector<1x32x32xf32> to vector<32x32xf32>
    %cst_28 = arith.constant dense<0.000000e+00> : vector<16x32xf32>
    %52 = tpu.matmul %49, %51, %cst_28 {dimension_numbers = #tpu.dot_dimension_numbers<[1], [0], [0], [1], [0, 0, 1, 1], [], []>} : vector<16x32xf32>, vector<32x32xf32>, vector<16x32xf32> -> vector<16x32xf32>
    %53 = arith.addf %31, %52 : vector<16x32xf32>
    %54 = arith.addf %1, %53 : vector<16x32xf32>
    %c0_29 = arith.constant 0 : index
    %c0_30 = arith.constant 0 : index
    %c0_31 = arith.constant 0 : index
    %55 = vector.load %arg6[%c0_29, %c0_30, %c0_31] : memref<2x1x32xf32, #tpu.memory_space<vmem>>, vector<1x1x32xf32>
    %56 = vector.shape_cast %55 : vector<1x1x32xf32> to vector<1x32xf32>
    %57 = vector.broadcast %56 : vector<1x32xf32> to vector<16x32xf32>
    %58 = arith.addf %54, %57 : vector<16x32xf32>
    %cst_32 = arith.constant dense<0.000000e+00> : vector<16xf32>
    %59 = vector.multi_reduction <add>, %58, %cst_32 [1] : vector<16x32xf32> to vector<16xf32>
    %60 = vector.shape_cast %59 : vector<16xf32> to vector<16x1xf32>
    %cst_33 = arith.constant 3.200000e+01 : f32
    %61 = vector.broadcast %cst_33 : f32 to vector<16x1xf32>
    %62 = arith.divf %60, %61 : vector<16x1xf32>
    %63 = vector.broadcast %62 : vector<16x1xf32> to vector<16x32xf32>
    %64 = arith.subf %58, %63 : vector<16x32xf32>
    %65 = arith.mulf %64, %64 : vector<16x32xf32>
    %cst_34 = arith.constant dense<0.000000e+00> : vector<16xf32>
    %66 = vector.multi_reduction <add>, %65, %cst_34 [1] : vector<16x32xf32> to vector<16xf32>
    %67 = vector.shape_cast %66 : vector<16xf32> to vector<16x1xf32>
    %cst_35 = arith.constant 3.200000e+01 : f32
    %68 = vector.broadcast %cst_35 : f32 to vector<16x1xf32>
    %69 = arith.divf %67, %68 : vector<16x1xf32>
    %cst_36 = arith.constant 9.99999974E-6 : f32
    %70 = vector.broadcast %cst_36 : f32 to vector<16x1xf32>
    %71 = arith.addf %69, %70 : vector<16x1xf32>
    %72 = math.rsqrt %71 : vector<16x1xf32>
    %73 = vector.broadcast %72 : vector<16x1xf32> to vector<16x32xf32>
    %74 = arith.mulf %64, %73 : vector<16x32xf32>
    %c0_37 = arith.constant 0 : index
    %c0_38 = arith.constant 0 : index
    %c0_39 = arith.constant 0 : index
    %75 = vector.load %arg7[%c0_37, %c0_38, %c0_39] : memref<2x1x32xf32, #tpu.memory_space<vmem>>, vector<1x1x32xf32>
    %76 = vector.shape_cast %75 : vector<1x1x32xf32> to vector<1x32xf32>
    %77 = vector.broadcast %76 : vector<1x32xf32> to vector<16x32xf32>
    %78 = arith.mulf %74, %77 : vector<16x32xf32>
    %c0_40 = arith.constant 0 : index
    %c0_41 = arith.constant 0 : index
    %c0_42 = arith.constant 0 : index
    %79 = vector.load %arg8[%c0_40, %c0_41, %c0_42] : memref<2x1x32xf32, #tpu.memory_space<vmem>>, vector<1x1x32xf32>
    %80 = vector.shape_cast %79 : vector<1x1x32xf32> to vector<1x32xf32>
    %81 = vector.broadcast %80 : vector<1x32xf32> to vector<16x32xf32>
    %82 = arith.addf %78, %81 : vector<16x32xf32>
    %83 = tpu.concatenate %82, %82, %82, %82 in 1 : vector<16x32xf32>, vector<16x32xf32>, vector<16x32xf32>, vector<16x32xf32> -> vector<16x128xf32>
    %84 = arith.mulf %83, %2 : vector<16x128xf32>
    %c1_43 = arith.constant 1 : index
    %c0_44 = arith.constant 0 : index
    %c0_45 = arith.constant 0 : index
    %85 = vector.load %arg3[%c1_43, %c0_44, %c0_45] : memref<2x128x256xf32, #tpu.memory_space<vmem>>, vector<1x128x256xf32>
    %86 = vector.shape_cast %85 : vector<1x128x256xf32> to vector<128x256xf32>
    %cst_46 = arith.constant dense<0.000000e+00> : vector<16x256xf32>
    %87 = tpu.matmul %84, %86, %cst_46 {dimension_numbers = #tpu.dot_dimension_numbers<[1], [0], [0], [1], [0, 0, 1, 1], [], []>} : vector<16x128xf32>, vector<128x256xf32>, vector<16x256xf32> -> vector<16x256xf32>
    %c1_47 = arith.constant 1 : index
    %c0_48 = arith.constant 0 : index
    %c0_49 = arith.constant 0 : index
    %88 = vector.load %arg4[%c1_47, %c0_48, %c0_49] : memref<2x16x256xf32, #tpu.memory_space<vmem>>, vector<1x16x256xf32>
    %89 = vector.shape_cast %88 : vector<1x16x256xf32> to vector<16x256xf32>
    %90 = arith.addf %87, %89 : vector<16x256xf32>
    %91 = vector.extract_strided_slice %90 {offsets = [0, 0], sizes = [16, 32], strides = [1, 1]} : vector<16x256xf32> to vector<16x32xf32>
    %92 = vector.extract_strided_slice %90 {offsets = [0, 64], sizes = [16, 32], strides = [1, 1]} : vector<16x256xf32> to vector<16x32xf32>
    %93 = vector.extract_strided_slice %90 {offsets = [0, 128], sizes = [16, 32], strides = [1, 1]} : vector<16x256xf32> to vector<16x32xf32>
    %cst_50 = arith.constant dense<0.000000e+00> : vector<16x16xf32>
    %94 = tpu.matmul %91, %92, %cst_50 {dimension_numbers = #tpu.dot_dimension_numbers<[1], [1], [0], [0], [0, 0, 1, 0], [], []>} : vector<16x32xf32>, vector<16x32xf32>, vector<16x16xf32> -> vector<16x16xf32>
    %cst_51 = arith.constant 0.176776692 : f32
    %95 = vector.broadcast %cst_51 : f32 to vector<16x16xf32>
    %96 = arith.mulf %94, %95 : vector<16x16xf32>
    %cst_52 = arith.constant dense<0xFF800000> : vector<16xf32>
    %97 = vector.multi_reduction <maximumf>, %96, %cst_52 [1] : vector<16x16xf32> to vector<16xf32>
    %98 = vector.shape_cast %97 : vector<16xf32> to vector<16x1xf32>
    %99 = vector.broadcast %98 : vector<16x1xf32> to vector<16x16xf32>
    %100 = arith.subf %96, %99 : vector<16x16xf32>
    %101 = math.exp %100 : vector<16x16xf32>
    %cst_53 = arith.constant dense<0.000000e+00> : vector<16xf32>
    %102 = vector.multi_reduction <add>, %101, %cst_53 [1] : vector<16x16xf32> to vector<16xf32>
    %103 = vector.shape_cast %102 : vector<16xf32> to vector<16x1xf32>
    %cst_54 = arith.constant 1.000000e+00 : f32
    %104 = vector.broadcast %cst_54 : f32 to vector<16x1xf32>
    %105 = arith.divf %104, %103 : vector<16x1xf32>
    %cst_55 = arith.constant dense<0.000000e+00> : vector<16x32xf32>
    %106 = tpu.matmul %101, %93, %cst_55 {dimension_numbers = #tpu.dot_dimension_numbers<[1], [0], [0], [1], [0, 0, 1, 1], [], []>} : vector<16x16xf32>, vector<16x32xf32>, vector<16x32xf32> -> vector<16x32xf32>
    %107 = vector.broadcast %105 : vector<16x1xf32> to vector<16x32xf32>
    %108 = arith.mulf %106, %107 : vector<16x32xf32>
    %c2 = arith.constant 2 : index
    %c0_56 = arith.constant 0 : index
    %c0_57 = arith.constant 0 : index
    %109 = vector.load %arg5[%c2, %c0_56, %c0_57] : memref<4x32x32xf32, #tpu.memory_space<vmem>>, vector<1x32x32xf32>
    %110 = vector.shape_cast %109 : vector<1x32x32xf32> to vector<32x32xf32>
    %cst_58 = arith.constant dense<0.000000e+00> : vector<16x32xf32>
    %111 = tpu.matmul %108, %110, %cst_58 {dimension_numbers = #tpu.dot_dimension_numbers<[1], [0], [0], [1], [0, 0, 1, 1], [], []>} : vector<16x32xf32>, vector<32x32xf32>, vector<16x32xf32> -> vector<16x32xf32>
    %112 = vector.extract_strided_slice %90 {offsets = [0, 32], sizes = [16, 32], strides = [1, 1]} : vector<16x256xf32> to vector<16x32xf32>
    %113 = vector.extract_strided_slice %90 {offsets = [0, 96], sizes = [16, 32], strides = [1, 1]} : vector<16x256xf32> to vector<16x32xf32>
    %114 = vector.extract_strided_slice %90 {offsets = [0, 160], sizes = [16, 32], strides = [1, 1]} : vector<16x256xf32> to vector<16x32xf32>
    %cst_59 = arith.constant dense<0.000000e+00> : vector<16x16xf32>
    %115 = tpu.matmul %112, %113, %cst_59 {dimension_numbers = #tpu.dot_dimension_numbers<[1], [1], [0], [0], [0, 0, 1, 0], [], []>} : vector<16x32xf32>, vector<16x32xf32>, vector<16x16xf32> -> vector<16x16xf32>
    %cst_60 = arith.constant 0.176776692 : f32
    %116 = vector.broadcast %cst_60 : f32 to vector<16x16xf32>
    %117 = arith.mulf %115, %116 : vector<16x16xf32>
    %cst_61 = arith.constant dense<0xFF800000> : vector<16xf32>
    %118 = vector.multi_reduction <maximumf>, %117, %cst_61 [1] : vector<16x16xf32> to vector<16xf32>
    %119 = vector.shape_cast %118 : vector<16xf32> to vector<16x1xf32>
    %120 = vector.broadcast %119 : vector<16x1xf32> to vector<16x16xf32>
    %121 = arith.subf %117, %120 : vector<16x16xf32>
    %122 = math.exp %121 : vector<16x16xf32>
    %cst_62 = arith.constant dense<0.000000e+00> : vector<16xf32>
    %123 = vector.multi_reduction <add>, %122, %cst_62 [1] : vector<16x16xf32> to vector<16xf32>
    %124 = vector.shape_cast %123 : vector<16xf32> to vector<16x1xf32>
    %cst_63 = arith.constant 1.000000e+00 : f32
    %125 = vector.broadcast %cst_63 : f32 to vector<16x1xf32>
    %126 = arith.divf %125, %124 : vector<16x1xf32>
    %cst_64 = arith.constant dense<0.000000e+00> : vector<16x32xf32>
    %127 = tpu.matmul %122, %114, %cst_64 {dimension_numbers = #tpu.dot_dimension_numbers<[1], [0], [0], [1], [0, 0, 1, 1], [], []>} : vector<16x16xf32>, vector<16x32xf32>, vector<16x32xf32> -> vector<16x32xf32>
    %128 = vector.broadcast %126 : vector<16x1xf32> to vector<16x32xf32>
    %129 = arith.mulf %127, %128 : vector<16x32xf32>
    %c3 = arith.constant 3 : index
    %c0_65 = arith.constant 0 : index
    %c0_66 = arith.constant 0 : index
    %130 = vector.load %arg5[%c3, %c0_65, %c0_66] : memref<4x32x32xf32, #tpu.memory_space<vmem>>, vector<1x32x32xf32>
    %131 = vector.shape_cast %130 : vector<1x32x32xf32> to vector<32x32xf32>
    %cst_67 = arith.constant dense<0.000000e+00> : vector<16x32xf32>
    %132 = tpu.matmul %129, %131, %cst_67 {dimension_numbers = #tpu.dot_dimension_numbers<[1], [0], [0], [1], [0, 0, 1, 1], [], []>} : vector<16x32xf32>, vector<32x32xf32>, vector<16x32xf32> -> vector<16x32xf32>
    %133 = arith.addf %111, %132 : vector<16x32xf32>
    %134 = arith.addf %82, %133 : vector<16x32xf32>
    %c1_68 = arith.constant 1 : index
    %c0_69 = arith.constant 0 : index
    %c0_70 = arith.constant 0 : index
    %135 = vector.load %arg6[%c1_68, %c0_69, %c0_70] : memref<2x1x32xf32, #tpu.memory_space<vmem>>, vector<1x1x32xf32>
    %136 = vector.shape_cast %135 : vector<1x1x32xf32> to vector<1x32xf32>
    %137 = vector.broadcast %136 : vector<1x32xf32> to vector<16x32xf32>
    %138 = arith.addf %134, %137 : vector<16x32xf32>
    %cst_71 = arith.constant dense<0.000000e+00> : vector<16xf32>
    %139 = vector.multi_reduction <add>, %138, %cst_71 [1] : vector<16x32xf32> to vector<16xf32>
    %140 = vector.shape_cast %139 : vector<16xf32> to vector<16x1xf32>
    %cst_72 = arith.constant 3.200000e+01 : f32
    %141 = vector.broadcast %cst_72 : f32 to vector<16x1xf32>
    %142 = arith.divf %140, %141 : vector<16x1xf32>
    %143 = vector.broadcast %142 : vector<16x1xf32> to vector<16x32xf32>
    %144 = arith.subf %138, %143 : vector<16x32xf32>
    %145 = arith.mulf %144, %144 : vector<16x32xf32>
    %cst_73 = arith.constant dense<0.000000e+00> : vector<16xf32>
    %146 = vector.multi_reduction <add>, %145, %cst_73 [1] : vector<16x32xf32> to vector<16xf32>
    %147 = vector.shape_cast %146 : vector<16xf32> to vector<16x1xf32>
    %cst_74 = arith.constant 3.200000e+01 : f32
    %148 = vector.broadcast %cst_74 : f32 to vector<16x1xf32>
    %149 = arith.divf %147, %148 : vector<16x1xf32>
    %cst_75 = arith.constant 9.99999974E-6 : f32
    %150 = vector.broadcast %cst_75 : f32 to vector<16x1xf32>
    %151 = arith.addf %149, %150 : vector<16x1xf32>
    %152 = math.rsqrt %151 : vector<16x1xf32>
    %153 = vector.broadcast %152 : vector<16x1xf32> to vector<16x32xf32>
    %154 = arith.mulf %144, %153 : vector<16x32xf32>
    %c1_76 = arith.constant 1 : index
    %c0_77 = arith.constant 0 : index
    %c0_78 = arith.constant 0 : index
    %155 = vector.load %arg7[%c1_76, %c0_77, %c0_78] : memref<2x1x32xf32, #tpu.memory_space<vmem>>, vector<1x1x32xf32>
    %156 = vector.shape_cast %155 : vector<1x1x32xf32> to vector<1x32xf32>
    %157 = vector.broadcast %156 : vector<1x32xf32> to vector<16x32xf32>
    %158 = arith.mulf %154, %157 : vector<16x32xf32>
    %c1_79 = arith.constant 1 : index
    %c0_80 = arith.constant 0 : index
    %c0_81 = arith.constant 0 : index
    %159 = vector.load %arg8[%c1_79, %c0_80, %c0_81] : memref<2x1x32xf32, #tpu.memory_space<vmem>>, vector<1x1x32xf32>
    %160 = vector.shape_cast %159 : vector<1x1x32xf32> to vector<1x32xf32>
    %161 = vector.broadcast %160 : vector<1x32xf32> to vector<16x32xf32>
    %162 = arith.addf %158, %161 : vector<16x32xf32>
    %c0_82 = arith.constant 0 : index
    %c0_83 = arith.constant 0 : index
    %c0_84 = arith.constant 0 : index
    %163 = vector.load %arg9[%c0_82, %c0_83, %c0_84] : memref<1x16x32xf32, #tpu.memory_space<vmem>>, vector<1x16x32xf32>
    %164 = vector.shape_cast %163 : vector<1x16x32xf32> to vector<16x32xf32>
    %165 = vector.shape_cast %162 : vector<16x32xf32> to vector<1x16x32xf32>
    tpu.vector_store %arg9[%c0_82, %c0_83, %c0_84], %165 {strides = array<i32>} : memref<1x16x32xf32, #tpu.memory_space<vmem>>, vector<1x16x32xf32>,
    return
  }
  func.func @transform_0(%arg0: i32) -> (i32, i32, i32) {
    %c0_i32 = arith.constant 0 : i32
    %c0_i32_0 = arith.constant 0 : i32
    %c0_i32_1 = arith.constant 0 : i32
    return %arg0, %c0_i32, %c0_i32_0 : i32, i32, i32
  }
  func.func @transform_1(%arg0: i32) -> (i32, i32) {
    %c0_i32 = arith.constant 0 : i32
    %c0_i32_0 = arith.constant 0 : i32
    %c0_i32_1 = arith.constant 0 : i32
    return %c0_i32, %c0_i32_0 : i32, i32
  }
  func.func @transform_2(%arg0: i32) -> (i32, i32, i32) {
    %c0_i32 = arith.constant 0 : i32
    %c0_i32_0 = arith.constant 0 : i32
    %c0_i32_1 = arith.constant 0 : i32
    %c0_i32_2 = arith.constant 0 : i32
    return %c0_i32, %c0_i32_0, %c0_i32_1 : i32, i32, i32
  }
  func.func @transform_3(%arg0: i32) -> (i32, i32, i32) {
    %c0_i32 = arith.constant 0 : i32
    %c0_i32_0 = arith.constant 0 : i32
    %c0_i32_1 = arith.constant 0 : i32
    %c0_i32_2 = arith.constant 0 : i32
    return %c0_i32, %c0_i32_0, %c0_i32_1 : i32, i32, i32
  }
  func.func @transform_4(%arg0: i32) -> (i32, i32, i32) {
    %c0_i32 = arith.constant 0 : i32
    %c0_i32_0 = arith.constant 0 : i32
    %c0_i32_1 = arith.constant 0 : i32
    %c0_i32_2 = arith.constant 0 : i32
    return %c0_i32, %c0_i32_0, %c0_i32_1 : i32, i32, i32
  }
  func.func @transform_5(%arg0: i32) -> (i32, i32, i32) {
    %c0_i32 = arith.constant 0 : i32
    %c0_i32_0 = arith.constant 0 : i32
    %c0_i32_1 = arith.constant 0 : i32
    %c0_i32_2 = arith.constant 0 : i32
    return %c0_i32, %c0_i32_0, %c0_i32_1 : i32, i32, i32
  }
  func.func @transform_6(%arg0: i32) -> (i32, i32, i32) {
    %c0_i32 = arith.constant 0 : i32
    %c0_i32_0 = arith.constant 0 : i32
    %c0_i32_1 = arith.constant 0 : i32
    %c0_i32_2 = arith.constant 0 : i32
    return %c0_i32, %c0_i32_0, %c0_i32_1 : i32, i32, i32
  }
  func.func @transform_7(%arg0: i32) -> (i32, i32, i32) {
    %c0_i32 = arith.constant 0 : i32
    %c0_i32_0 = arith.constant 0 : i32
    %c0_i32_1 = arith.constant 0 : i32
    %c0_i32_2 = arith.constant 0 : i32
    return %c0_i32, %c0_i32_0, %c0_i32_1 : i32, i32, i32
  }
  func.func @transform_8(%arg0: i32) -> (i32, i32, i32) {
    %c0_i32 = arith.constant 0 : i32
    %c0_i32_0 = arith.constant 0 : i32
    %c0_i32_1 = arith.constant 0 : i32
    return %arg0, %c0_i32, %c0_i32_0 : i32, i32, i32
  }
}

</mosaic_0001>

<bundles_post_ra>
// kernel: tpu_custom_call.1
= control target key start
LH: loop header
LB: loop body
LE: loop exit
PB: predicated region body
PF: predicated region fallthrough
CT: control target
= control target key end

     0   :  { %s3322_s0 = inlined_call_operand.hbm [shape: f32[2,16,32], index: 0, kind: input, shape index: {}]   ;;  %s3323_s1 = inlined_call_operand.hbm [shape: f32[16,128], index: 1, kind: input, shape index: {}]   ;;  %s3324_s2 = inlined_call_operand.hbm [shape: f32[2,128,256], index: 2, kind: input, shape index: {}]   ;;  %s3325_s3 = inlined_call_operand.hbm [shape: f32[2,16,256], index: 3, kind: input, shape index: {}]   ;;  %s3326_s4 = inlined_call_operand.hbm [shape: f32[4,32,32], index: 4, kind: input, shape index: {}]   ;;  %s3327_s5 = inlined_call_operand.vmem [shape: f32[2,1,32], index: 5, kind: input, shape index: {}]   ;;  %s3328_s6 = inlined_call_operand.vmem [shape: f32[2,1,32], index: 6, kind: input, shape index: {}]   ;;  %s3329_s7 = inlined_call_operand.vmem [shape: f32[2,1,32], index: 7, kind: input, shape index: {}]   ;;  %s3330_s8 = inlined_call_operand.hbm [shape: f32[2,16,32], index: 8, kind: output, shape index: {}]  }
   0x1   :  { %3339 = sst [smem:[#allocation18_spill]] %s3330_s8 }
   0x2   :  { %13 = vsyncpa [#allocation3], 0 }
   0x3   :  { %15 = vsyncpa [#allocation3 + $0x1], 0 }
   0x4   :  { %16 = vsyncpa [#allocation6], 0 }
   0x5   :  { %17 = vsyncpa [#allocation9], 0 }
   0x6   :  { %18 = vsyncpa [#allocation4], 0 }
   0x7   :  { %20 = vsyncpa [#allocation4 + $0x1], 0  ;;  %s2869_s27 = smov 0   ;;  %s2871_s28 = smov 0  }
   0x8   :  { %s2873_s29 = smov 0   ;;  %s2875_s30 = smov 0  }
   0x9 LB: > { %3340 = sst [smem:[#allocation16_spill]] %s2794_s27  ;;  %s2890_s9 = sadd.s32 4294967295, %s2806_s30   ;;  %s2806_s30 = sphi %s2875_s30, %s3367_s30   ;;  %s2802_s29 = sphi %s2873_s29, %s3366_s29   ;;  %s2798_s28 = sphi %s2871_s28, %s3365_s28   ;;  %s2794_s27 = sphi %s2869_s27, %s3364_s27  }
   0xa   : > { %s2062_s10 = sadd.s32 4294967294, %s2806_s30   ;;  %p46_p0 = scmp.ne.s32.totalorder %s2798_s28, %s2794_s27 }
   0xb   : > { %p3331_p1 = scmp.eq.s32.totalorder %s2890_s9, 0  ;;  %p223_p3 = scmp.eq.s32.totalorder %s2062_s10, 1 }
   0xc   : > { %p2063_p5 = scmp.ge.s32.totalorder %s2806_s30, 1  ;;  %p230_p7 = scmp.lt.s32.totalorder %s2806_s30, 3 }
   0xd   : > { %p2899_p4 = por %p3331_p1, %p46_p0  ;;  %p2904_p6 = por %p223_p3, %p46_p0 }
   0xe   : > { %p2909_p8 = pnand %p2063_p5, %p230_p7  ;;  %s2808_s14 = smov [#allocation5]  }
   0xf   : > { %s3341_s11 = scalar_select %p2899_p4, 1, 0 }
  0x10   : > { %s3342_s12 = scalar_select %p2904_p6, 1, 0 }
  0x11   : > { %s3344_s13 = scalar_select %p2909_p8, 1, 0 }
  0x12   : > { %3343 = sst [smem:[#allocation17_spill]] %s3342_s12  ;;  %s242_s15 = sshll.u32 %s2808_s14, 4  ;;  %s243_s15 = int_to_ptr.vmem [resolvable:$true] %s242_s15 }
  0x13   : > { %p2443_p9 = pneg %p2909_p8  ;;  %s2809_s17 = smov [#allocation8]  }
  0x14   : > { %s268_s18 = sshll.u32 %s2809_s17, 4  ;;  %s2590_s21 = scalar_lea.hbm %s3323_s1, 256  ;;  %s269_s18 = int_to_ptr.vmem [resolvable:$true] %s268_s18 }
  0x15   : > { %p2918_p11 = pnand %p2443_p9, %p3331_p1  ;;  %p2591_p12 = scmp.ne.s32.totalorder %s3323_s1, %s2590_s21 }
  0x16   : > { %p2597_p5 = scmp.lt.u32.totalorder %s2590_s21, %s3323_s1 }
  0x17   : > { %p2930_p13 = pneg %p2918_p11 }
  0x19   : > { %p2593_p0 = pnand %p2930_p13, %p2591_p12 }
  0x1b   : > { %p2594_p3 = pneg %p2593_p0 }
  0x1d   : > { %p2599_p7 = pnand %p2597_p5, %p2594_p3 }
  0x1f   : > { %2602 = shalt.err (!%p2599_p7)
}
  0x20   : > { %s2603_s10 = scalar_lea.vmem %s243_s15, 256  ;;  %p2611_p2 = scmp.lt.s32.totalorder %s243_s15, %s243_s15 }
  0x21   : > { %p2604_p9 = scmp.ne.s32.totalorder %s243_s15, %s2603_s10  ;;  %p2612_p6 = scmp.lt.s32.totalorder %s2603_s10, %s2603_s10 }
  0x23   : > { %p2606_p10 = pnand %p2604_p9, %p2930_p13  ;;  %p2613_p4 = por %p2612_p6, %p2611_p2 }
  0x25   : > { %p2607_p1 = pneg %p2606_p10 }
  0x27   : > { %p2614_p8 = pnand %p2613_p4, %p2607_p1 }
  0x29   : > { %2617 = shalt.err (!%p2614_p8)
}
  0x2a   : > { %s3337_s14 = smov 128   ;;  %s2811_s17 = smov 8  }
  0x2b   : > { %2446 = dma.hbm_to_vmem [thread:$0]  (!%p2918_p11), %s3323_s1, 256, %s243_s15, [#allocation6], %s3337_s14, %s3337_s14, %s2811_s17  }
  0x2c   : > { %s2812_s21 = smov [#allocation7]   ;;  %s2618_s26 = scalar_lea.hbm %s3325_s3, 1024 }
  0x2d   : > { %s255_s22 = sshll.u32 %s2812_s21, 4  ;;  %p2619_p1 = scmp.ne.s32.totalorder %s3325_s3, %s2618_s26  ;;  %s256_s22 = int_to_ptr.vmem [resolvable:$true] %s255_s22 }
  0x2e   : > { %p2625_p6 = scmp.lt.u32.totalorder %s2618_s26, %s3325_s3 }
  0x2f   : > { %p2621_p2 = pnand %p2619_p1, %p2930_p13 }
  0x31   : > { %p2622_p4 = pneg %p2621_p2 }
  0x33   : > { %p2627_p8 = pnand %p2625_p6, %p2622_p4 }
  0x35   : > { %2630 = shalt.err (!%p2627_p8)
}
  0x36   : > { %s2631_s15 = scalar_lea.vmem %s269_s18, 1024  ;;  %p2639_p3 = scmp.lt.s32.totalorder %s269_s18, %s269_s18 }
  0x37   : > { %p2632_p10 = scmp.ne.s32.totalorder %s269_s18, %s2631_s15  ;;  %p2640_p5 = scmp.lt.s32.totalorder %s2631_s15, %s2631_s15 }
  0x39   : > { %p2634_p12 = pnand %p2632_p10, %p2930_p13  ;;  %p2641_p7 = por %p2640_p5, %p2639_p3 }
  0x3b   : > { %p2635_p0 = pneg %p2634_p12 }
  0x3d   : > { %p2642_p9 = pnand %p2641_p7, %p2635_p0 }
  0x3f   : > { %2645 = shalt.err (!%p2642_p9)
}
  0x40   : > { %s2813_s12 = smov 256   ;;  %s2814_s19 = smov 16  }
  0x41   : > { %2452 = dma.hbm_to_vmem [thread:$0]  (!%p2918_p11), %s3325_s3, 1024, %s269_s18, [#allocation9], %s2813_s12, %s2813_s12, %s2814_s19  }
  0x42   : > { %s2646_s23 = scalar_lea.hbm %s3324_s2, 8192 }
  0x43   : > { %p2647_p1 = scmp.ne.s32.totalorder %s3324_s2, %s2646_s23  ;;  %p2653_p6 = scmp.lt.u32.totalorder %s2646_s23, %s3324_s2 }
  0x45   : > { %p2649_p2 = pnand %p2647_p1, %p2930_p13 }
  0x47   : > { %p2650_p4 = pneg %p2649_p2 }
  0x49   : > { %p2655_p8 = pnand %p2653_p6, %p2650_p4 }
  0x4b   : > { %2658 = shalt.err (!%p2655_p8)
}
  0x4c   : > { %s2659_s8 = scalar_lea.vmem %s256_s22, 8192  ;;  %p2667_p3 = scmp.lt.s32.totalorder %s256_s22, %s256_s22 }
  0x4d   : > { %p2660_p10 = scmp.ne.s32.totalorder %s256_s22, %s2659_s8  ;;  %p2668_p5 = scmp.lt.s32.totalorder %s2659_s8, %s2659_s8 }
  0x4f   : > { %p2662_p12 = pnand %p2660_p10, %p2930_p13  ;;  %p2669_p7 = por %p2668_p5, %p2667_p3 }
  0x51   : > { %p2663_p0 = pneg %p2662_p12 }
  0x53   : > { %p2670_p9 = pnand %p2669_p7, %p2663_p0 }
  0x55   : > { %2673 = shalt.err (!%p2670_p9)
}
  0x56   : > { %2449 = dma.hbm_to_vmem [thread:$0]  (!%p2918_p11), %s3324_s2, 8192, %s256_s22, [#allocation6], %s2813_s12, %s2813_s12, %s2814_s19  }
  0x57   : > { %s2815_s20 = smov [#allocation10]   ;;  %s2674_s26 = scalar_lea.hbm %s3326_s4, 2048 }
  0x58   : > { %s281_s21 = sshll.u32 %s2815_s20, 4  ;;  %p2675_p1 = scmp.ne.s32.totalorder %s3326_s4, %s2674_s26  ;;  %s282_s21 = int_to_ptr.vmem [resolvable:$true] %s281_s21 }
  0x59   : > { %p2681_p6 = scmp.lt.u32.totalorder %s2674_s26, %s3326_s4 }
  0x5a   : > { %p2677_p2 = pnand %p2675_p1, %p2930_p13 }
  0x5c   : > { %p2678_p4 = pneg %p2677_p2 }
  0x5e   : > { %p2683_p8 = pnand %p2681_p6, %p2678_p4 }
  0x60   : > { %2686 = shalt.err (!%p2683_p8)
}
  0x61   : > { %s2687_s22 = scalar_lea.vmem %s282_s21, 2048  ;;  %p2695_p3 = scmp.lt.s32.totalorder %s282_s21, %s282_s21 }
  0x62   : > { %p2688_p10 = scmp.ne.s32.totalorder %s282_s21, %s2687_s22  ;;  %p2696_p5 = scmp.lt.s32.totalorder %s2687_s22, %s2687_s22 }
  0x64   : > { %p2690_p12 = pnand %p2688_p10, %p2930_p13  ;;  %p2697_p7 = por %p2696_p5, %p2695_p3 }
  0x66   : > { %p2691_p0 = pneg %p2690_p12 }
  0x68   : > { %p2698_p9 = pnand %p2697_p7, %p2691_p0 }
  0x6a   : > { %2701 = shalt.err (!%p2698_p9)
}
  0x6b   : > { %s3347_s12 = smov 128   ;;  %s3007_s24 = sadd.s32 1, %s2806_s30  }
  0x6c   : > { %2455 = dma.hbm_to_vmem [thread:$0]  (!%p2918_p11), %s3326_s4, 2048, %s282_s21, [#allocation9], %s3347_s12, %s3347_s12, %s2811_s17  }
  0x6d   : > { %s33_s16 = sadd.s32 1, %s2802_s29  ;;  %s30_s18 = ssub.s32 %s2806_s30, %s3007_s24 }
  0x6e   : > { %p40_p13 = scmp.ne.s32.totalorder %s2802_s29, %s2798_s28  ;;  %p31_p1 = scmp.eq.s32.totalorder %s30_s18, 0 }
  0x6f   : > { %p41_p2 = scmp.eq.s32.totalorder %s2806_s30, 0  ;;  %p3348_p4 = scmp.eq.s32.totalorder %s2890_s9, 1 }
  0x70   : > { %p2468_p8 = scmp.lt.s32.totalorder %s2806_s30, 2  ;;  %s304_s23 = sand.u32 1, %s2802_s29  }
  0x71   : > { %p3017_p6 = por %p3348_p4, %p40_p13  ;;  %p42_p10 = por %p41_p2, %p40_p13 }
  0x72   : > { %s3023_s20 = scalar_select %p31_p1, %s2802_s29, %s33_s16  }
  0x73   : > { %s2069_s25 = sshll.u32 %s304_s23, 4  ;;  %s2125_s21 = sshll.u32 %s2806_s30, 8 }
  0x74   : > { %s3030_s15 = scalar_lea.hbm %s3322_s0, %s2125_s21  ;;  %s308_s8 = scalar_lea.vmem [#allocation2], %s2069_s25 }
  0x75   : > { %s315_s22 = sshll.u32 %s308_s8, 4  ;;  %p3034_p11 = pnand %p2468_p8, %p42_p10  ;;  %s3032_s22 = int_to_ptr.vmem [resolvable:$true] %s315_s22 }
  0x76   : > { %s3038_s19 = scalar_lea.sflag [#allocation3], %s304_s23  ;;  %s2702_s16 = scalar_lea.hbm %s3030_s15, 256 }
  0x77   : > { %p2703_p12 = scmp.ne.s32.totalorder %s3030_s15, %s2702_s16  ;;  %p2704_p0 = pneg %p3034_p11 }
  0x78   : > { %s2707_s21 = scalar_lea.hbm %s3322_s0, 512  ;;  %p2708_p7 = scmp.lt.u32.totalorder %s3030_s15, %s3322_s0 }
  0x79   : > { %p2705_p3 = pnand %p2704_p0, %p2703_p12  ;;  %p2709_p9 = scmp.lt.u32.totalorder %s2707_s21, %s2702_s16 }
  0x7a   : > { %p2711_p1 = scmp.lt.u32.totalorder %s2702_s16, %s3030_s15 }
  0x7b   : > { %p2706_p5 = pneg %p2705_p3  ;;  %p2710_p13 = por %p2709_p9, %p2708_p7 }
  0x7d   : > { %p2712_p2 = por %p2711_p1, %p2710_p13 }
  0x7f   : > { %p2713_p4 = pnand %p2712_p2, %p2706_p5 }
  0x81   : > { %2716 = shalt.err (!%p2713_p4)
}
  0x82   : > { %s2717_s23 = scalar_lea.vmem %s3032_s22, 256  ;;  %s2816_s8 = smov [#allocation2]  }
  0x83   : > { %p2718_p8 = scmp.ne.s32.totalorder %s3032_s22, %s2717_s23  ;;  %s2722_s18 = sshll.u32 %s2816_s8, 4  ;;  %s2723_s18 = int_to_ptr.vmem [resolvable:$false] %s2722_s18 }
  0x84   : > { %s2724_s25 = scalar_lea.vmem %s2723_s18, 512  ;;  %p2725_p3 = scmp.lt.s32.totalorder %s3032_s22, %s2723_s18 }
  0x85   : > { %p2720_p10 = pnand %p2718_p8, %p2704_p0  ;;  %p2726_p7 = scmp.lt.s32.totalorder %s2724_s25, %s2717_s23 }
  0x87   : > { %p2721_p12 = pneg %p2720_p10  ;;  %p2727_p9 = por %p2726_p7, %p2725_p3 }
  0x89   : > { %p2728_p13 = pnand %p2727_p9, %p2721_p12 }
  0x8b   : > { %2731 = shalt.err (!%p2728_p13)
}
  0x8c   : > { %2459 = dma.hbm_to_vmem [thread:$0]  (!%p3034_p11), %s3030_s15, 256, %s3032_s22, %s3038_s19, %s3347_s12, %s3347_s12, %s2811_s17  }
  0x8d   : > { %p3351_p0 = scmp.ne.s32.totalorder %s3344_s13, 0 }
  0x8e   : > { %s3072_s16 = sand.u32 (!%p3351_p0), 1, %s2798_s28   ;;  %p3352_p5 = scmp.ne.s32.totalorder (!%p3351_p0), %s3341_s11, 0 }
  0x8f   : > { %327 = sbr.rel (%p3351_p0) target bundleno = 4139 (0x102b), region = 52  ;;  %s2073_s21 = sshll.u32 (!%p3351_p0), %s3072_s16, 4 }
  0x90   : > { %s330_s26 = scalar_lea.sflag (!%p3351_p0), [#allocation3], %s3072_s16  ;;  %s333_s14 = scalar_lea.vmem (!%p3351_p0), [#allocation2], %s2073_s21 }
  0x96   : > { %2777 = dma.done.wait (%p3352_p5), %s330_s26, 256  }
  0x97   : > { %2779 = vsyncadd (%p3352_p5), %s330_s26, 4294967040  ;;  %p3353_p11 = scmp.eq.s32.totalorder %s2890_s9, 0 }
  0x99   : > { %2781 = dma.done.wait (%p3353_p11), [#allocation6], 8448   ;;  %p3354_p1 = pmov %p3353_p11 }
  0x9b   : > { %2783 = vsyncadd (%p3354_p1), [#allocation6], 4294958848  ;;  %p3355_p2 = pmov %p3354_p1 }
  0x9c   : > { %p3356_p4 = pmov %p3354_p1 }
  0x9d   : > { %2785 = dma.done.wait (%p3355_p2), [#allocation9], 3072  }
  0x9e   : > { %2787 = vsyncadd (%p3356_p4), [#allocation9], 4294964224  ;;  %v2817_v0 = vmov 0.0   ;;  %v3091_v1 = vld [vmem:[%s333_s14] sm:$0xff]  ;;  %v418_v2 = vld [vmem:[#allocation7 + $0x8] sm:$0xff]  ;;  %s2818_s11 = smov 32  }
  0x9f   : > { %517 = vmatprep.mubr.f32.mxu0 %v2817_v0  ;;  %388 = vrot.lane.b32.xlu0 %v3091_v1, %s2818_s11  ;;  %s2819_s13 = smov 96   ;;  %v420_v3 = vld [vmem:[#allocation7 + $0x18] sm:$0xff]  ;;  %v417_v4 = vld [vmem:[#allocation7] sm:$0xff]  ;;  %v419_v5 = vld [vmem:[#allocation7 + $0x10] sm:$0xff]  ;;  %s2820_s17 = smov 64   ;;  %vm406_vm0 = vcmask 261120  }
  0xa0   : > { %400 = vrot.lane.b32.xlu1 %v3091_v1, %s2819_s13  ;;  %v3097_v6 = vld [vmem:[%s333_s14 + $0x8] sm:$0xff]  ;;  %v2283_v7 = vpack.c.bf16 %v420_v3, %v418_v2  ;;  %v2285_v8 = vpack.c.bf16 %v419_v5, %v417_v4  ;;  %v421_v12 = vld [vmem:[#allocation7 + $0x20] sm:$0xff]  ;;  %v423_v13 = vld [vmem:[#allocation7 + $0x30] sm:$0xff]  ;;  %vm409_vm1 = vcmask 523264   ;;  %vm412_vm2 = vcmask 785408   ;;  %s3359_s19 = sld [smem:[#allocation18_spill]] }
  0xa1   : > { %v422_v9 = vld [vmem:[#allocation7 + $0x28] sm:$0xff]  ;;  %v424_v10 = vld [vmem:[#allocation7 + $0x38] sm:$0xff]  ;;  %v2289_v16 = vpack.c.bf16 %v423_v13, %v421_v12  ;;  %v425_v18 = vld [vmem:[#allocation7 + $0x40] sm:$0xff]  ;;  %vm621_vm4 = vcmask 130048  }
  0xa2   : > { %v2287_v11 = vpack.c.bf16 %v424_v10, %v422_v9  ;;  %2284 = vmatprep.subr.bf16.mxu0 %v2283_v7  ;;  %v426_v14 = vld [vmem:[#allocation7 + $0x48] sm:$0xff]  ;;  %v428_v15 = vld [vmem:[#allocation7 + $0x58] sm:$0xff]  ;;  %v427_v19 = vld [vmem:[#allocation7 + $0x50] sm:$0xff] }
  0xa3   : > { %394 = vrot.lane.b32.xlu0 %v3091_v1, %s2820_s17  ;;  %2286 = vmatpush1.bf16.msra.mxu0 %v2285_v8  ;;  %v2291_v17 = vpack.c.bf16 %v428_v15, %v426_v14  ;;  %v430_v20 = vld [vmem:[#allocation7 + $0x68] sm:$0xff]  ;;  %v432_v21 = vld [vmem:[#allocation7 + $0x78] sm:$0xff]  ;;  %v2293_v22 = vpack.c.bf16 %v427_v19, %v425_v18  ;;  %v429_v24 = vld [vmem:[#allocation7 + $0x60] sm:$0xff] }
  0xa4   : > { %390 = vrot.lane.b32.xlu1 %v3097_v6, %s2818_s11  ;;  %2288 = vmatprep.subr.bf16.mxu0 %v2287_v11  ;;  %v2295_v23 = vpack.c.bf16 %v432_v21, %v430_v20  ;;  %v431_v25 = vld [vmem:[#allocation7 + $0x70] sm:$0xff]  ;;  %v434_v26 = vld [vmem:[#allocation7 + $0x88] sm:$0xff]  ;;  %v436_v27 = vld [vmem:[#allocation7 + $0x98] sm:$0xff] }
  0xa5   : > { %v2297_v28 = vpack.c.bf16 %v431_v25, %v429_v24  ;;  %v2299_v29 = vpack.c.bf16 %v436_v27, %v434_v26  ;;  %v433_v30 = vld [vmem:[#allocation7 + $0x80] sm:$0xff]  ;;  %v435_v31 = vld [vmem:[#allocation7 + $0x90] sm:$0xff]  ;;  %v438_v32 = vld [vmem:[#allocation7 + $0xa8] sm:$0xff] }
  0xa6   : > { %v440_v33 = vld [vmem:[#allocation7 + $0xb8] sm:$0xff]  ;;  %v2301_v34 = vpack.c.bf16 %v435_v31, %v433_v30  ;;  %v437_v36 = vld [vmem:[#allocation7 + $0xa0] sm:$0xff]  ;;  %v439_v37 = vld [vmem:[#allocation7 + $0xb0] sm:$0xff] }
  0xa7   : > { %396 = vrot.lane.b32.xlu0 %v3097_v6, %s2820_s17  ;;  %2290 = vmatpush1.bf16.msra.mxu0 %v2289_v16  ;;  %v2303_v35 = vpack.c.bf16 %v440_v33, %v438_v32  ;;  %v442_v38 = vld [vmem:[#allocation7 + $0xc8] sm:$0xff]  ;;  %v444_v39 = vld [vmem:[#allocation7 + $0xd8] sm:$0xff]  ;;  %v2305_v40 = vpack.c.bf16 %v439_v37, %v437_v36  ;;  %v441_v42 = vld [vmem:[#allocation7 + $0xc0] sm:$0xff] }
  0xa8   : > { %402 = vrot.lane.b32.xlu1 %v3097_v6, %s2819_s13  ;;  %2292 = vmatprep.subr.bf16.mxu0 %v2291_v17  ;;  %v2307_v41 = vpack.c.bf16 %v444_v39, %v442_v38  ;;  %v443_v43 = vld [vmem:[#allocation7 + $0xd0] sm:$0xff]  ;;  %v446_v44 = vld [vmem:[#allocation7 + $0xe8] sm:$0xff]  ;;  %v448_v45 = vld [vmem:[#allocation7 + $0xf8] sm:$0xff] }
  0xa9   : > { %v2309_v46 = vpack.c.bf16 %v443_v43, %v441_v42  ;;  %v2311_v47 = vpack.c.bf16 %v448_v45, %v446_v44  ;;  %v445_v48 = vld [vmem:[#allocation7 + $0xe0] sm:$0xff]  ;;  %v447_v49 = vld [vmem:[#allocation7 + $0xf0] sm:$0xff]  ;;  %v3116_v62 = vld [vmem:[#allocation5 + $0x8] sm:$0xff] }
  0xaa   : > { %v2313_v50 = vpack.c.bf16 %v447_v49, %v445_v48  ;;  %v3109_v56 = vld [vmem:[#allocation5] sm:$0xff]  ;;  %v449_v5 = vld [vmem:[#allocation8] sm:$0xff]  ;;  %v450_v11 = vld [vmem:[#allocation8 + $0x8] sm:$0xff] }
  0xab   : > { %2294 = vmatpush1.bf16.msra.mxu0 %v2293_v22  ;;  %v451_v10 = vld [vmem:[#allocation8 + $0x10] sm:$0xff]  ;;  %v452_v12 = vld [vmem:[#allocation8 + $0x18] sm:$0xff]  ;;  %vm3127_vm3 = vmpackc.low %vm406_vm0, %vm406_vm0 }
  0xac   : > { %2296 = vmatprep.subr.bf16.mxu0 %v2295_v23 }
  0xaf   : > { %2298 = vmatpush1.bf16.msra.mxu0 %v2297_v28 }
  0xb0   : > { %2300 = vmatprep.subr.bf16.mxu0 %v2299_v29 }
  0xb3   : > { %2302 = vmatpush1.bf16.msra.mxu0 %v2301_v34 }
  0xb4   : > { %2304 = vmatprep.subr.bf16.mxu0 %v2303_v35 }
  0xb7   : > { %2306 = vmatpush1.bf16.msra.mxu0 %v2305_v40 }
  0xb8   : > { %2308 = vmatprep.subr.bf16.mxu0 %v2307_v41 }
  0xbb   : > { %2310 = vmatpush1.bf16.msra.mxu0 %v2309_v46 }
  0xbc   : > { %2312 = vmatprep.subr.bf16.mxu0 %v2311_v47 }
  0xbf   : > { %2314 = vmatpush1.bf16.msra.mxu0 %v2313_v50 }
 0x111   : > { %v389_v51 = vpop.permute.xlu0 %388 }
 0x112   : > { %v401_v52 = vpop.permute.xlu1 %400  ;;  %v407_v53 = vsel %vm406_vm0, %v3091_v1, %v389_v51 }
 0x115   : > { %v395_v54 = vpop.permute.xlu0 %394 }
 0x116   : > { %v391_v55 = vpop.permute.xlu1 %390  ;;  %v410_v57 = vsel %vm409_vm1, %v407_v53, %v395_v54 }
 0x117   : > { %v413_v58 = vsel %vm412_vm2, %v410_v57, %v401_v52  ;;  %v408_v60 = vsel %vm406_vm0, %v3097_v6, %v391_v55 }
 0x118   : > { %v415_v59 = vmul.f32 %v413_v58, %v3109_v56 }
 0x119   : > { %v397_v61 = vpop.permute.xlu0 %396 }
 0x11a   : > { %v403_v63 = vpop.permute.xlu1 %402  ;;  %v411_v2 = vsel %vm409_vm1, %v408_v60, %v397_v61  ;;  %518 = vmatmul.mubr.f32.vlgmr.msra.gmra.mrb[0].mxu0 %v415_v59 }
 0x11b   : > { %v414_v3 = vsel %vm412_vm2, %v411_v2, %v403_v63  ;;  %523 = vmatprep.mubr.f32.mxu0 %v2817_v0 }
 0x11c   : > { %v416_v4 = vmul.f32 %v414_v3, %v3116_v62 }
 0x11e   : > { %524 = vmatmul.mubr.f32.gmra.mrb[2].mxu0 %v416_v4 }
 0x11f   : > { %1290 = vmatprep.mubr.f32.mxu0 %v2817_v0 }
 0x1ed   : > { %v519_v7 = vpop.f32.mrb[0].mxu0 }
 0x1ee   : > { %v520_v8 = vadd.f32 %v519_v7, %v449_v5  ;;  %v521_v9 = vpop.f32.mrb[1].mxu0 }
 0x1ef   : > { %v522_v16 = vadd.f32 %v521_v9, %v450_v11  ;;  %v938_v11 = vld [vmem:[#allocation10 + $0x20] sm:$0xff] }
 0x1f0   : > { %2187 = vmatprep.mubr.msk.f32.mxu1 %vm406_vm0, %v520_v8 }
 0x1f1   : > { %v525_v13 = vpop.f32.mrb[2].mxu0 }
 0x1f2   : > { %v526_v14 = vadd.f32 %v525_v13, %v451_v10  ;;  %v527_v15 = vpop.f32.mrb[3].mxu0 }
 0x1f3   : > { %v528_v17 = vadd.f32 %v527_v15, %v452_v12  ;;  %v939_v12 = vld [vmem:[#allocation10 + $0x28] sm:$0xff]  ;;  %v941_v15 = vld [vmem:[#allocation10 + $0x38] sm:$0xff] }
 0x1f4   : > { %v2520_v18 = vpack.i.bf16 %v526_v14, %v520_v8  ;;  %v2335_v13 = vpack.c.bf16 %v939_v12, %v938_v11  ;;  %v1197_v11 = vld [vmem:[#allocation7 + $0x140] sm:$0xff]  ;;  %v1199_v12 = vld [vmem:[#allocation7 + $0x150] sm:$0xff] }
 0x1f5   : > { %v2530_v19 = vpack.i.bf16 %v528_v17, %v522_v16  ;;  %v2321_v20 = vpack.c.bf16 %v528_v17, %v522_v16  ;;  %v727_v17 = vld [vmem:[#allocation10] sm:$0xff] }
 0x1f6   : > { %2521 = vrot.lane.b32.xlu0 %v2520_v18, %s2820_s17 }
 0x268   : > { %v2522_v21 = vpop.permute.xlu0 %2521 }
 0x269   : > { %v2524_v22 = vunpack.i.h.bf16 %v2522_v21  ;;  %v2523_v23 = vunpack.i.l.bf16 %v2522_v21 }
 0x26b   : > { %v2315_v25 = vpack.c.bf16 %v2524_v22, %v2523_v23 }
 0x26d   : > { %2317 = vmatprep.subr.msk.bf16.mxu1 %vm3127_vm3, %v2315_v25 }
 0x26e   : > { %2320 = vmatpush3.bf16.xpose.msk.msra.mxu1 %vm3127_vm3, %v2315_v25 }
 0x26f   : > { %2322 = vmatprep.subr.bf16.mxu1 %v2321_v20 }
 0x275   : > { %2188 = vmatmul.mubr.msk.f32.vlgmr.msra.gmra.mrb[0].mxu1 %vm406_vm0, %v526_v14 }
 0x276   : > { %2324 = vmatpush3.bf16.msra.mxu1 %v2321_v20 }
 0x348   : > { %v2189_v26 = vpop.f32.mrb[0].mxu1 }
 0x349   : > { %v620_v27 = vmul.f32 0.17677669, %v2189_v26  ;;  %v610_v28 = vpop.f32.mrb[1].mxu1 }
 0x34a   : > { %v619_v29 = vmul.f32 0.17677669, %v610_v28  ;;  %v730_v28 = vld [vmem:[#allocation10 + $0x18] sm:$0xff] }
 0x34b   : > { %v625_v30 = vsel %vm621_vm4, %v620_v27, -inf }
 0x34c   : > { %626 = vmax.xlane.f32.xlu0 %v625_v30  ;;  %v622_v31 = vsel %vm621_vm4, %v619_v29, -inf }
 0x34d   : > { %623 = vmax.xlane.f32.xlu1 %v622_v31 }
 0x35e   : > { %731 = vrot.lane.b32.xlu1 %v520_v8, %s2819_s13 }
 0x362   : > { %2526 = vrot.lane.b32.xlu0 %v2520_v18, %s2818_s11  ;;  %733 = vrot.lane.b32.xlu1 %v526_v14, %s2819_s13  ;;  %v940_v14 = vld [vmem:[#allocation10 + $0x30] sm:$0xff]  ;;  %v728_v18 = vld [vmem:[#allocation10 + $0x8] sm:$0xff] }
 0x363   : > { %v2339_v16 = vpack.c.bf16 %v941_v15, %v940_v14  ;;  %v1204_v14 = vld [vmem:[#allocation7 + $0x178] sm:$0xff]  ;;  %v2361_v15 = vpack.c.bf16 %v1199_v12, %v1197_v11 }
 0x3d9   : > { %v627_v32 = vpop.xlane.xlu0 %626 }
 0x3da   : > { %v629_v33 = vsub.f32 %v620_v27, %v627_v32  ;;  %v624_v34 = vpop.xlane.xlu1 %623  ;;  %v729_v27 = vld [vmem:[#allocation10 + $0x10] sm:$0xff] }
 0x3db   : > { %v628_v35 = vsub.f32 %v619_v29, %v624_v34  ;;  %v2347_v34 = vpack.c.bf16 %v730_v28, %v729_v27  ;;  %v1212_v27 = vld [vmem:[#allocation7 + $0x1b8] sm:$0xff] }
 0x3dc   : > { %v632_v36 = vmul.f32 1.442695, %v629_v33 }
 0x3dd   : > { %v630_v37 = vmul.f32 1.442695, %v628_v35  ;;  %v2527_v38 = vpop.permute.xlu0 %2526 }
 0x3de   : > { %v2529_v39 = vunpack.i.h.bf16 %v2527_v38  ;;  %v2528_v40 = vunpack.i.l.bf16 %v2527_v38  ;;  %v732_v44 = vpop.permute.xlu1 %731 }
 0x3df   : > { %2550 = vpow2.f32 %v630_v37 }
 0x3e0   : > { %2552 = vpow2.f32 %v632_v36  ;;  %v2325_v41 = vpack.c.bf16 %v2529_v39, %v2528_v40  ;;  %v2095_v39 = vld [vmem:[%s3327_s5] ss:$0 sm:$0xff] }
 0x3e2   : > { %2327 = vmatprep.subr.msk.bf16.mxu1 %vm3127_vm3, %v2325_v41  ;;  %v734_v45 = vpop.permute.xlu1 %733 }
 0x3e9   : > { %v2551_v42 = vpop.eup %2550 }
 0x3ea   : > { %v2553_v43 = vpop.eup %2552  ;;  %2194 = vmatprep.mubr.msk.f32.mxu1 %vm621_vm4, %v2551_v42  ;;  %v634_v9 = vsel %vm621_vm4, %v2551_v42, 0.0 }
 0x3eb   : > { %2195 = vmatmul.mubr.msk.f32.vlgmr.msra.gmra.mrb[2].mxu1 %vm621_vm4, %v2553_v43  ;;  %v637_v10 = vsel %vm621_vm4, %v2553_v43, 0.0 }
 0x3ec   : > { %2330 = vmatpush3.bf16.xpose.msk.msra.mxu1 %vm3127_vm3, %v2325_v41  ;;  %2201 = vmatprep.mubr.msk.f32.mxu1 %vm406_vm0, %v732_v44 }
 0x3f3   : > { %2202 = vmatmul.mubr.msk.f32.vlgmr.msra.gmra.mrb[4].mxu1 %vm406_vm0, %v734_v45 }
 0x4be   : > { %v3149_v46 = vpop.f32.mrb[2].mxu1 }
 0x4bf   : > { %v3151_v47 = vpop.f32.mrb[3].mxu1 }
 0x4c6   : > { %v2203_v48 = vpop.f32.mrb[4].mxu1 }
 0x4c7   : > { %v823_v49 = vmul.f32 0.17677669, %v2203_v48  ;;  %v813_v50 = vpop.f32.mrb[5].mxu1 }
 0x4c8   : > { %v822_v51 = vmul.f32 0.17677669, %v813_v50 }
 0x4c9   : > { %v827_v52 = vsel %vm621_vm4, %v823_v49, -inf }
 0x4ca   : > { %828 = vmax.xlane.f32.xlu1 %v827_v52  ;;  %v824_v53 = vsel %vm621_vm4, %v822_v51, -inf }
 0x4cb   : > { %825 = vmax.xlane.f32.xlu0 %v824_v53 }
 0x4e1   : > { %2531 = vrot.lane.b32.xlu0 %v2530_v19, %s2819_s13  ;;  %v2343_v19 = vpack.c.bf16 %v728_v18, %v727_v17  ;;  %v1201_v17 = vld [vmem:[#allocation7 + $0x160] sm:$0xff]  ;;  %v1203_v18 = vld [vmem:[#allocation7 + $0x170] sm:$0xff] }
 0x557   : > { %v829_v54 = vpop.xlane.xlu1 %828 }
 0x558   : > { %v831_v55 = vsub.f32 %v823_v49, %v829_v54  ;;  %v826_v57 = vpop.xlane.xlu0 %825 }
 0x559   : > { %v830_v58 = vsub.f32 %v822_v51, %v826_v57  ;;  %v1192_v57 = vld [vmem:[#allocation7 + $0x118] sm:$0xff] }
 0x55a   : > { %v834_v59 = vmul.f32 1.442695, %v831_v55  ;;  %v1190_v55 = vld [vmem:[#allocation7 + $0x108] sm:$0xff] }
 0x55b   : > { %v832_v60 = vmul.f32 1.442695, %v830_v58  ;;  %v1189_v58 = vld [vmem:[#allocation7 + $0x100] sm:$0xff] }
 0x55c   : > { %v2532_v61 = vpop.permute.xlu0 %2531 }
 0x55d   : > { %2554 = vpow2.f32 %v832_v60  ;;  %v2534_v63 = vunpack.i.h.bf16 %v2532_v61  ;;  %v2533_v2 = vunpack.i.l.bf16 %v2532_v61  ;;  %v1191_v60 = vld [vmem:[#allocation7 + $0x110] sm:$0xff]  ;;  %v1194_v61 = vld [vmem:[#allocation7 + $0x128] sm:$0xff] }
 0x55e   : > { %2556 = vpow2.f32 %v834_v59  ;;  %v2351_v59 = vpack.c.bf16 %v1192_v57, %v1190_v55 }
 0x55f   : > { %v2331_v3 = vpack.c.bf16 %v2534_v63, %v2533_v2  ;;  %v1196_v63 = vld [vmem:[#allocation7 + $0x138] sm:$0xff]  ;;  %v2353_v2 = vpack.c.bf16 %v1191_v60, %v1189_v58 }
 0x560   : > { %2352 = vmatprep.subr.bf16.mxu0 %v2351_v59 }
 0x561   : > { %2332 = vmatprep.subr.bf16.mxu1 %v2331_v3  ;;  %2354 = vmatpush1.bf16.msra.mxu0 %v2353_v2 }
 0x562   : > { %2334 = vmatpush3.bf16.msra.mxu1 %v2331_v3  ;;  %v2355_v3 = vpack.c.bf16 %v1196_v63, %v1194_v61 }
 0x563   : > { %2336 = vmatprep.subr.bf16.mxu1 %v2335_v13 }
 0x564   : > { %2356 = vmatprep.subr.bf16.mxu0 %v2355_v3 }
 0x567   : > { %v2555_v4 = vpop.eup %2554 }
 0x568   : > { %v2557_v5 = vpop.eup %2556  ;;  %2208 = vmatprep.mubr.msk.f32.mxu1 %vm621_vm4, %v2555_v4  ;;  %v836_v7 = vsel %vm621_vm4, %v2555_v4, 0.0  ;;  %v1193_v4 = vld [vmem:[#allocation7 + $0x120] sm:$0xff] }
 0x569   : > { %837 = vadd.xlane.f32.xlu1 %v836_v7  ;;  %2209 = vmatmul.mubr.msk.f32.vlgmr.msra.gmra.mrb[6].mxu1 %vm621_vm4, %v2557_v5  ;;  %v839_v8 = vsel %vm621_vm4, %v2557_v5, 0.0  ;;  %v1195_v5 = vld [vmem:[#allocation7 + $0x130] sm:$0xff]  ;;  %v1198_v7 = vld [vmem:[#allocation7 + $0x148] sm:$0xff] }
 0x56a   : > { %2338 = vmatpush3.bf16.msra.mxu1 %v2335_v13  ;;  %v1202_v13 = vld [vmem:[#allocation7 + $0x168] sm:$0xff] }
 0x56b   : > { %2340 = vmatprep.subr.bf16.mxu1 %v2339_v16 }
 0x56d   : > { %840 = vadd.xlane.f32.xlu1 %v839_v8  ;;  %v1200_v8 = vld [vmem:[#allocation7 + $0x158] sm:$0xff] }
 0x56e   : > { %2342 = vmatpush3.bf16.msra.mxu1 %v2339_v16  ;;  %v2363_v16 = vpack.c.bf16 %v1204_v14, %v1202_v13  ;;  %v1222_v14 = vld [vmem:[#allocation8 + $0x20] sm:$0xff] }
 0x56f   : > { %2344 = vmatprep.subr.bf16.mxu1 %v2343_v19 }
 0x571   : > { %635 = vadd.xlane.f32.xlu1 %v634_v9  ;;  %v2357_v9 = vpack.c.bf16 %v1195_v5, %v1193_v4 }
 0x573   : > { %2358 = vmatpush1.bf16.msra.mxu0 %v2357_v9 }
 0x575   : > { %638 = vadd.xlane.f32.xlu1 %v637_v10  ;;  %v2359_v10 = vpack.c.bf16 %v1200_v8, %v1198_v7 }
 0x577   : > { %2360 = vmatprep.subr.bf16.mxu0 %v2359_v10 }
 0x578   : > { %2362 = vmatpush1.bf16.msra.mxu0 %v2361_v15 }
 0x579   : > { %2364 = vmatprep.subr.bf16.mxu0 %v2363_v16 }
 0x5f6   : > { %v838_v20 = vpop.xlane.xlu1 %837 }
 0x5f7   : > { %2558 = vrcp.f32 %v838_v20  ;;  %v1208_v20 = vld [vmem:[#allocation7 + $0x198] sm:$0xff] }
 0x5fa   : > { %v841_v21 = vpop.xlane.xlu1 %840 }
 0x5fe   : > { %v636_v22 = vpop.xlane.xlu1 %635 }
 0x5ff   : > { %2560 = vrcp.f32 %v636_v22 }
 0x600   : > { %2562 = vrcp.f32 %v841_v21  ;;  %v2365_v21 = vpack.c.bf16 %v1203_v18, %v1201_v17  ;;  %v1224_v17 = vld [vmem:[#allocation8 + $0x30] sm:$0xff]  ;;  %v1225_v18 = vld [vmem:[#allocation8 + $0x38] sm:$0xff] }
 0x601   : > { %v2559_v25 = vpop.eup %2558 }
 0x602   : > { %v639_v23 = vpop.xlane.xlu1 %638  ;;  %2366 = vmatpush1.bf16.msra.mxu0 %v2365_v21 }
 0x603   : > { %2564 = vrcp.f32 %v639_v23  ;;  %v1205_v23 = vld [vmem:[#allocation7 + $0x180] sm:$0xff] }
 0x609   : > { %v2561_v29 = vpop.eup %2560 }
 0x60a   : > { %v2563_v31 = vpop.eup %2562  ;;  %v725_v35 = vmul.f32 %v2561_v29, %v3151_v47 }
 0x60d   : > { %v2565_v36 = vpop.eup %2564 }
 0x60e   : > { %v726_v37 = vmul.f32 %v2565_v36, %v3149_v46 }
 0x63c   : > { %v2210_v26 = vpop.f32.mrb[6].mxu1 }
 0x63d   : > { %v926_v30 = vpop.f32.mrb[7].mxu1  ;;  %v936_v33 = vmul.f32 %v2563_v31, %v2210_v26  ;;  %v1210_v26 = vld [vmem:[#allocation7 + $0x1a8] sm:$0xff]  ;;  %v1211_v31 = vld [vmem:[#allocation7 + $0x1b0] sm:$0xff] }
 0x63e   : > { %v935_v32 = vmul.f32 %v2559_v25, %v926_v30  ;;  %v1207_v25 = vld [vmem:[#allocation7 + $0x190] sm:$0xff]  ;;  %v2371_v29 = vpack.c.bf16 %v1212_v27, %v1210_v26  ;;  %v1209_v30 = vld [vmem:[#allocation7 + $0x1a0] sm:$0xff] }
 0x63f   : > { %v2369_v28 = vpack.c.bf16 %v1207_v25, %v1205_v23 }
 0x640   : > { %2219 = vmatprep.mubr.msk.f32.mxu1 %vm406_vm0, %v935_v32  ;;  %v2373_v32 = vpack.c.bf16 %v1211_v31, %v1209_v30 }
 0x641   : > { %2220 = vmatmul.mubr.msk.f32.vlgmr.msra.gmra.mrb[8].mxu1 %vm406_vm0, %v936_v33 }
 0x642   : > { %2346 = vmatpush3.bf16.msra.mxu1 %v2343_v19  ;;  %2230 = vmatprep.mubr.msk.f32.mxu1 %vm406_vm0, %v725_v35  ;;  %v1206_v19 = vld [vmem:[#allocation7 + $0x188] sm:$0xff] }
 0x643   : > { %2348 = vmatprep.subr.bf16.mxu1 %v2347_v34  ;;  %v2367_v22 = vpack.c.bf16 %v1208_v20, %v1206_v19 }
 0x645   : > { %2368 = vmatprep.subr.bf16.mxu0 %v2367_v22 }
 0x646   : > { %2350 = vmatpush3.bf16.msra.mxu1 %v2347_v34  ;;  %2370 = vmatpush1.bf16.msra.mxu0 %v2369_v28 }
 0x647   : > { %2372 = vmatprep.subr.bf16.mxu0 %v2371_v29 }
 0x649   : > { %2231 = vmatmul.mubr.msk.f32.vlgmr.msra.gmra.mrb[8].mxu1 %vm406_vm0, %v726_v37 }
 0x64a   : > { %2374 = vmatpush1.bf16.msra.mxu0 %v2373_v32 }
 0x71c   : > { %v2232_v38 = vpop.f32.mrb[8].mxu1 }
 0x71d   : > { %v1105_v40 = vadd.f32 %v2232_v38, %v3097_v6  ;;  %v1095_v41 = vpop.f32.mrb[9].mxu1  ;;  %v1214_v38 = vld [vmem:[#allocation7 + $0x1c8] sm:$0xff] }
 0x71e   : > { %v1104_v42 = vadd.f32 %v1095_v41, %v3091_v1 }
 0x71f   : > { %v1114_v43 = vadd.f32 %v2095_v39, %v1105_v40 }
 0x720   : > { %v1113_v44 = vadd.f32 %v2095_v39, %v1104_v42  ;;  %v1216_v39 = vld [vmem:[#allocation7 + $0x1d8] sm:$0xff]  ;;  %v1213_v42 = vld [vmem:[#allocation7 + $0x1c0] sm:$0xff] }
 0x721   : > { %v1118_v45 = vsel %vm406_vm0, %v1114_v43, 0.0  ;;  %v2375_v41 = vpack.c.bf16 %v1216_v39, %v1214_v38 }
 0x722   : > { %1119 = vadd.xlane.f32.xlu0 %v1118_v45  ;;  %v1115_v47 = vsel %vm406_vm0, %v1113_v44, 0.0  ;;  %v1218_v45 = vld [vmem:[#allocation7 + $0x1e8] sm:$0xff] }
 0x723   : > { %1116 = vadd.xlane.f32.xlu1 %v1115_v47  ;;  %2376 = vmatprep.subr.bf16.mxu0 %v2375_v41  ;;  %v1220_v47 = vld [vmem:[#allocation7 + $0x1f8] sm:$0xff] }
 0x7af   : > { %v1120_v46 = vpop.xlane.xlu0 %1119 }
 0x7b0   : > { %v1123_v48 = vmul.f32 0.03125, %v1120_v46  ;;  %v1117_v49 = vpop.xlane.xlu1 %1116  ;;  %v2379_v46 = vpack.c.bf16 %v1220_v47, %v1218_v45 }
 0x7b1   : > { %v1122_v50 = vmul.f32 0.03125, %v1117_v49  ;;  %v1219_v49 = vld [vmem:[#allocation7 + $0x1f0] sm:$0xff] }
 0x7b2   : > { %v3175_v51 = vsub.f32 %v1114_v43, %v1123_v48  ;;  %v1215_v43 = vld [vmem:[#allocation7 + $0x1d0] sm:$0xff]  ;;  %v1217_v48 = vld [vmem:[#allocation7 + $0x1e0] sm:$0xff] }
 0x7b3   : > { %v3177_v52 = vsub.f32 %v1113_v44, %v1122_v50  ;;  %v2377_v44 = vpack.c.bf16 %v1215_v43, %v1213_v42  ;;  %v2381_v50 = vpack.c.bf16 %v1219_v49, %v1217_v48 }
 0x7b4   : > { %v1127_v53 = vmul.f32 %v3175_v51, %v3175_v51 }
 0x7b5   : > { %v1126_v6 = vmul.f32 %v3177_v52, %v3177_v52  ;;  %2378 = vmatpush1.bf16.msra.mxu0 %v2377_v44 }
 0x7b6   : > { %v1131_v54 = vsel %vm406_vm0, %v1127_v53, 0.0  ;;  %2380 = vmatprep.subr.bf16.mxu0 %v2379_v46 }
 0x7b7   : > { %v1128_v1 = vsel %vm406_vm0, %v1126_v6, 0.0 }
 0x7b8   : > { %1129 = vadd.xlane.f32.xlu1 %v1128_v1  ;;  %v2096_v1 = vld [vmem:[%s3328_s6] ss:$0 sm:$0xff] }
 0x7b9   : > { %2382 = vmatpush1.bf16.msra.mxu0 %v2381_v50 }
 0x7bc   : > { %1132 = vadd.xlane.f32.xlu1 %v1131_v54  ;;  %v2097_v54 = vld [vmem:[%s3329_s7] ss:$0 sm:$0xff] }
 0x845   : > { %v1130_v33 = vpop.xlane.xlu1 %1129 }
 0x846   : > { %v1134_v34 = vmul.f32 0.03125, %v1130_v33 }
 0x848   : > { %v1136_v35 = vadd.f32 1e-05, %v1134_v34 }
 0x849   : > { %v1133_v36 = vpop.xlane.xlu1 %1132 }
 0x84a   : > { %2566 = vrsqrt.f32 %v1136_v35  ;;  %v1135_v37 = vmul.f32 0.03125, %v1133_v36 }
 0x84c   : > { %v1137_v40 = vadd.f32 1e-05, %v1135_v37 }
 0x84e   : > { %2568 = vrsqrt.f32 %v1137_v40 }
 0x854   : > { %v2567_v6 = vpop.eup %2566 }
 0x855   : > { %v1140_v53 = vmul.f32 %v2567_v6, %v3177_v52 }
 0x857   : > { %v1149_v55 = vmul.f32 %v2096_v1, %v1140_v53 }
 0x858   : > { %v2569_v57 = vpop.eup %2568 }
 0x859   : > { %v1141_v58 = vmul.f32 %v2569_v57, %v3175_v51  ;;  %v3193_v59 = vadd.f32 %v2097_v54, %v1149_v55 }
 0x85b   : > { %1174 = vrot.lane.b32.xlu0 %v3193_v59, %s2819_s13  ;;  %1162 = vrot.lane.b32.xlu1 %v3193_v59, %s2818_s11  ;;  %v1150_v60 = vmul.f32 %v2096_v1, %v1141_v58 }
 0x85d   : > { %v3201_v52 = vadd.f32 %v2097_v54, %v1150_v60 }
 0x85f   : > { %1168 = vrot.lane.b32.xlu1 %v3193_v59, %s2820_s17 }
 0x863   : > { %1164 = vrot.lane.b32.xlu1 %v3201_v52, %s2818_s11 }
 0x867   : > { %1170 = vrot.lane.b32.xlu1 %v3201_v52, %s2820_s17 }
 0x86b   : > { %1176 = vrot.lane.b32.xlu1 %v3201_v52, %s2819_s13 }
 0x8cd   : > { %v1163_v51 = vpop.permute.xlu1 %1162  ;;  %v1175_v2 = vpop.permute.xlu0 %1174 }
 0x8ce   : > { %v1180_v61 = vsel %vm406_vm0, %v3193_v59, %v1163_v51 }
 0x8d1   : > { %v1169_v63 = vpop.permute.xlu1 %1168 }
 0x8d2   : > { %v1182_v3 = vsel %vm409_vm1, %v1180_v61, %v1169_v63  ;;  %v1500_v61 = vld [vmem:[#allocation10 + $0x40] sm:$0xff]  ;;  %v1501_v63 = vld [vmem:[#allocation10 + $0x48] sm:$0xff] }
 0x8d3   : > { %v1184_v4 = vsel %vm412_vm2, %v1182_v3, %v1175_v2  ;;  %v2411_v2 = vpack.c.bf16 %v1501_v63, %v1500_v61  ;;  %v1502_v3 = vld [vmem:[#allocation10 + $0x50] sm:$0xff] }
 0x8d4   : > { %v1186_v5 = vmul.f32 %v1184_v4, %v3109_v56  ;;  %v1503_v4 = vld [vmem:[#allocation10 + $0x58] sm:$0xff] }
 0x8d5   : > { %v1165_v7 = vpop.permute.xlu1 %1164  ;;  %2412 = vmatprep.subr.bf16.mxu0 %v2411_v2 }
 0x8d6   : > { %1291 = vmatmul.mubr.f32.vlgmr.msra.gmra.mrb[4].mxu0 %v1186_v5  ;;  %v1181_v9 = vsel %vm406_vm0, %v3201_v52, %v1165_v7  ;;  %v2415_v5 = vpack.c.bf16 %v1503_v4, %v1502_v3 }
 0x8d7   : > { %1296 = vmatprep.mubr.f32.mxu0 %v2817_v0  ;;  %v1223_v0 = vld [vmem:[#allocation8 + $0x28] sm:$0xff]  ;;  %2414 = vmatpush3.bf16.msra.mxu0 %v2411_v2 }
 0x8d8   : > { %2416 = vmatprep.subr.bf16.mxu0 %v2415_v5 }
 0x8d9   : > { %v1171_v8 = vpop.permute.xlu1 %1170 }
 0x8da   : > { %v1183_v10 = vsel %vm409_vm1, %v1181_v9, %v1171_v8 }
 0x8db   : > { %2418 = vmatpush3.bf16.msra.mxu0 %v2415_v5 }
 0x8dd   : > { %v1177_v11 = vpop.permute.xlu1 %1176 }
 0x8de   : > { %v1185_v12 = vsel %vm412_vm2, %v1183_v10, %v1177_v11 }
 0x8df   : > { %v1187_v13 = vmul.f32 %v1185_v12, %v3116_v62 }
 0x8e1   : > { %1297 = vmatmul.mubr.f32.gmra.mrb[6].mxu0 %v1187_v13 }
 0x9a9   : > { %v1292_v15 = vpop.f32.mrb[4].mxu0 }
 0x9aa   : > { %v1293_v16 = vadd.f32 %v1292_v15, %v1222_v14  ;;  %v1294_v56 = vpop.f32.mrb[5].mxu0 }
 0x9ab   : > { %v1295_v22 = vadd.f32 %v1294_v56, %v1223_v0 }
 0x9ac   : > { %2237 = vmatprep.mubr.msk.f32.mxu1 %vm406_vm0, %v1293_v16 }
 0x9b4   : > { %v1298_v19 = vpop.f32.mrb[6].mxu0 }
 0x9b5   : > { %v1299_v20 = vadd.f32 %v1298_v19, %v1224_v17  ;;  %v1300_v21 = vpop.f32.mrb[7].mxu0 }
 0x9b6   : > { %v1301_v23 = vadd.f32 %v1300_v21, %v1225_v18 }
 0x9b7   : > { %v2535_v25 = vpack.i.bf16 %v1299_v20, %v1293_v16 }
 0x9b8   : > { %v2545_v26 = vpack.i.bf16 %v1301_v23, %v1295_v22  ;;  %v2389_v27 = vpack.c.bf16 %v1301_v23, %v1295_v22 }
 0x9b9   : > { %2536 = vrot.lane.b32.xlu1 %v2535_v25, %s2820_s17  ;;  %s381_s17 = scalar_lea.vmem [#allocation11], %s2073_s21  ;;  %s2821_s21 = smov [#allocation11]  }
 0x9ba   : > { %s1951_s12 = sshll.u32 %s381_s17, 4  ;;  %s2736_s8 = sshll.u32 %s2821_s21, 4  ;;  %s3277_s12 = int_to_ptr.vmem [resolvable:$true] %s1951_s12  ;;  %s2737_s8 = int_to_ptr.vmem [resolvable:$false] %s2736_s8 }
 0x9bb   : > { %s2732_s23 = scalar_lea.vmem %s3277_s12, 256  ;;  %s2738_s18 = scalar_lea.vmem %s2737_s8, 512 }
 0x9bc   : > { %p2733_p8 = scmp.ne.s32.totalorder %s3277_s12, %s2732_s23  ;;  %p2739_p3 = scmp.lt.s32.totalorder %s3277_s12, %s2737_s8 }
 0x9bd   : > { %p2740_p7 = scmp.lt.s32.totalorder %s2738_s18, %s2732_s23 }
 0x9be   : > { %p2734_p10 = pnand %p2733_p8, %p3017_p6 }
 0x9bf   : > { %p2741_p9 = por %p2740_p7, %p2739_p3 }
 0x9c0   : > { %p2735_p12 = pneg %p2734_p10 }
 0x9c2   : > { %p2742_p13 = pnand %p2741_p9, %p2735_p12 }
 0xa2b   : > { %v2537_v62 = vpop.permute.xlu1 %2536 }
 0xa2c   : > { %v2539_v28 = vunpack.i.h.bf16 %v2537_v62  ;;  %v2538_v29 = vunpack.i.l.bf16 %v2537_v62 }
 0xa2e   : > { %v2383_v30 = vpack.c.bf16 %v2539_v28, %v2538_v29  ;;  %v1713_v28 = vld [vmem:[#allocation10 + $0x70] sm:$0xff]  ;;  %v1714_v29 = vld [vmem:[#allocation10 + $0x78] sm:$0xff] }
 0xa30   : > { %2385 = vmatprep.subr.msk.bf16.mxu1 %vm3127_vm3, %v2383_v30 }
 0xa31   : > { %2388 = vmatpush3.bf16.xpose.msk.msra.mxu1 %vm3127_vm3, %v2383_v30  ;;  %v2407_v30 = vpack.c.bf16 %v1714_v29, %v1713_v28 }
 0xa32   : > { %2390 = vmatprep.subr.bf16.mxu1 %v2389_v27 }
 0xa38   : > { %2238 = vmatmul.mubr.msk.f32.vlgmr.msra.gmra.mrb[10].mxu1 %vm406_vm0, %v1299_v20 }
 0xa39   : > { %2392 = vmatpush3.bf16.msra.mxu1 %v2389_v27  ;;  %v1712_v27 = vld [vmem:[#allocation10 + $0x68] sm:$0xff] }
 0xb0b   : > { %v2239_v31 = vpop.f32.mrb[10].mxu1 }
 0xb0c   : > { %v1393_v32 = vmul.f32 0.17677669, %v2239_v31  ;;  %v1383_v33 = vpop.f32.mrb[11].mxu1 }
 0xb0d   : > { %v1392_v34 = vmul.f32 0.17677669, %v1383_v33 }
 0xb0e   : > { %v1397_v35 = vsel %vm621_vm4, %v1393_v32, -inf }
 0xb0f   : > { %1398 = vmax.xlane.f32.xlu0 %v1397_v35  ;;  %v1394_v36 = vsel %vm621_vm4, %v1392_v34, -inf }
 0xb10   : > { %1395 = vmax.xlane.f32.xlu1 %v1394_v36 }
 0xb21   : > { %1504 = vrot.lane.b32.xlu1 %v1293_v16, %s2819_s13 }
 0xb25   : > { %2541 = vrot.lane.b32.xlu0 %v2535_v25, %s2818_s11  ;;  %1506 = vrot.lane.b32.xlu1 %v1299_v20, %s2819_s13 }
 0xb9c   : > { %v1399_v37 = vpop.xlane.xlu0 %1398 }
 0xb9d   : > { %v1401_v38 = vsub.f32 %v1393_v32, %v1399_v37  ;;  %v1396_v39 = vpop.xlane.xlu1 %1395 }
 0xb9e   : > { %v1400_v40 = vsub.f32 %v1392_v34, %v1396_v39 }
 0xb9f   : > { %v1404_v41 = vmul.f32 1.442695, %v1401_v38 }
 0xba0   : > { %v1402_v42 = vmul.f32 1.442695, %v1400_v40  ;;  %v2542_v43 = vpop.permute.xlu0 %2541 }
 0xba1   : > { %v2544_v44 = vunpack.i.h.bf16 %v2542_v43  ;;  %v2543_v45 = vunpack.i.l.bf16 %v2542_v43  ;;  %v1505_v49 = vpop.permute.xlu1 %1504 }
 0xba2   : > { %2570 = vpow2.f32 %v1402_v42 }
 0xba3   : > { %2572 = vpow2.f32 %v1404_v41  ;;  %v2393_v47 = vpack.c.bf16 %v2544_v44, %v2543_v45  ;;  %v2115_v45 = vld [vmem:[%s3327_s5 + $0x1] ss:$0 sm:$0xff] }
 0xba5   : > { %2395 = vmatprep.subr.msk.bf16.mxu1 %vm3127_vm3, %v2393_v47  ;;  %v1507_v50 = vpop.permute.xlu1 %1506 }
 0xbac   : > { %v2571_v46 = vpop.eup %2570 }
 0xbad   : > { %v2573_v48 = vpop.eup %2572  ;;  %2244 = vmatprep.mubr.msk.f32.mxu1 %vm621_vm4, %v2571_v46  ;;  %v1406_v24 = vsel %vm621_vm4, %v2571_v46, 0.0 }
 0xbae   : > { %2245 = vmatmul.mubr.msk.f32.vlgmr.msra.gmra.mrb[12].mxu1 %vm621_vm4, %v2573_v48  ;;  %v1409_v51 = vsel %vm621_vm4, %v2573_v48, 0.0 }
 0xbaf   : > { %2398 = vmatpush3.bf16.xpose.msk.msra.mxu1 %vm3127_vm3, %v2393_v47  ;;  %2251 = vmatprep.mubr.msk.f32.mxu1 %vm406_vm0, %v1505_v49 }
 0xbb6   : > { %2252 = vmatmul.mubr.msk.f32.vlgmr.msra.gmra.mrb[14].mxu1 %vm406_vm0, %v1507_v50 }
 0xc81   : > { %v2246_v6 = vpop.f32.mrb[12].mxu1 }
 0xc82   : > { %v1488_v1 = vpop.f32.mrb[13].mxu1 }
 0xc89   : > { %v2253_v53 = vpop.f32.mrb[14].mxu1 }
 0xc8a   : > { %v1596_v54 = vmul.f32 0.17677669, %v2253_v53  ;;  %v1586_v55 = vpop.f32.mrb[15].mxu1 }
 0xc8b   : > { %v1595_v57 = vmul.f32 0.17677669, %v1586_v55 }
 0xc8c   : > { %v1600_v58 = vsel %vm621_vm4, %v1596_v54, -inf }
 0xc8d   : > { %1601 = vmax.xlane.f32.xlu0 %v1600_v58  ;;  %v1597_v60 = vsel %vm621_vm4, %v1595_v57, -inf }
 0xc8e   : > { %1598 = vmax.xlane.f32.xlu1 %v1597_v60 }
 0xc92   : > { %1407 = vadd.xlane.f32.xlu1 %v1406_v24 }
 0xc96   : > { %1410 = vadd.xlane.f32.xlu1 %v1409_v51 }
 0xca3   : > { %2546 = vrot.lane.b32.xlu0 %v2545_v26, %s2819_s13  ;;  %v1711_v26 = vld [vmem:[#allocation10 + $0x60] sm:$0xff]  ;;  %s2126_s13 = sshll.u32 %s2890_s9, 8  ;;  %s1938_s9 = scalar_lea.sflag [#allocation4], %s3072_s16 }
 0xca4   : > { %v2403_v62 = vpack.c.bf16 %v1712_v27, %v1711_v26  ;;  %s3275_s10 = scalar_lea.hbm %s3359_s19, %s2126_s13 }
 0xd1a   : > { %v1602_v7 = vpop.xlane.xlu0 %1601 }
 0xd1b   : > { %v1604_v8 = vsub.f32 %v1596_v54, %v1602_v7  ;;  %v1599_v9 = vpop.xlane.xlu1 %1598  ;;  %v2117_v7 = vld [vmem:[%s3328_s6 + $0x1] ss:$0 sm:$0xff] }
 0xd1c   : > { %v1603_v10 = vsub.f32 %v1595_v57, %v1599_v9  ;;  %v2119_v9 = vld [vmem:[%s3329_s7 + $0x1] ss:$0 sm:$0xff] }
 0xd1d   : > { %v1607_v11 = vmul.f32 1.442695, %v1604_v8 }
 0xd1e   : > { %v1605_v12 = vmul.f32 1.442695, %v1603_v10  ;;  %v2547_v13 = vpop.permute.xlu0 %2546 }
 0xd1f   : > { %2574 = vpow2.f32 %v1607_v11  ;;  %v2549_v14 = vunpack.i.h.bf16 %v2547_v13  ;;  %v2548_v15 = vunpack.i.l.bf16 %v2547_v13  ;;  %v1408_v16 = vpop.xlane.xlu1 %1407 }
 0xd20   : > { %2576 = vpow2.f32 %v1605_v12 }
 0xd21   : > { %v2399_v56 = vpack.c.bf16 %v2549_v14, %v2548_v15  ;;  %2578 = vrcp.f32 %v1408_v16 }
 0xd23   : > { %2400 = vmatprep.subr.bf16.mxu1 %v2399_v56  ;;  %v1411_v17 = vpop.xlane.xlu1 %1410 }
 0xd24   : > { %2580 = vrcp.f32 %v1411_v17  ;;  %2402 = vmatpush3.bf16.msra.mxu1 %v2399_v56 }
 0xd25   : > { %2404 = vmatprep.subr.bf16.mxu1 %v2403_v62 }
 0xd29   : > { %v2575_v0 = vpop.eup %2574 }
 0xd2a   : > { %v2577_v18 = vpop.eup %2576  ;;  %v1612_v25 = vsel %vm621_vm4, %v2575_v0, 0.0 }
 0xd2b   : > { %v2579_v19 = vpop.eup %2578  ;;  %2258 = vmatprep.mubr.msk.f32.mxu1 %vm621_vm4, %v2577_v18  ;;  %v1609_v20 = vsel %vm621_vm4, %v2577_v18, 0.0 }
 0xd2c   : > { %2259 = vmatmul.mubr.msk.f32.vlgmr.msra.gmra.mrb[16].mxu1 %vm621_vm4, %v2575_v0  ;;  %1610 = vadd.xlane.f32.xlu1 %v1609_v20  ;;  %v1497_v21 = vmul.f32 %v2579_v19, %v1488_v1 }
 0xd2d   : > { %2406 = vmatpush3.bf16.msra.mxu1 %v2403_v62 }
 0xd2e   : > { %v2581_v22 = vpop.eup %2580  ;;  %2280 = vmatprep.mubr.msk.f32.mxu0 %vm406_vm0, %v1497_v21  ;;  %2408 = vmatprep.subr.bf16.mxu1 %v2407_v30 }
 0xd2f   : > { %v1498_v23 = vmul.f32 %v2581_v22, %v2246_v6 }
 0xd30   : > { %1613 = vadd.xlane.f32.xlu1 %v1612_v25 }
 0xd31   : > { %2281 = vmatmul.mubr.msk.f32.vlgmr.msra.gmra.mrb[8].mxu0 %vm406_vm0, %v1498_v23  ;;  %2410 = vmatpush3.bf16.msra.mxu1 %v2407_v30 }
 0xdb9   : > { %v1611_v31 = vpop.xlane.xlu1 %1610 }
 0xdba   : > { %2582 = vrcp.f32 %v1611_v31 }
 0xdbd   : > { %v1614_v32 = vpop.xlane.xlu1 %1613 }
 0xdbe   : > { %2584 = vrcp.f32 %v1614_v32 }
 0xdc4   : > { %v2583_v34 = vpop.eup %2582 }
 0xdc8   : > { %v2585_v36 = vpop.eup %2584 }
 0xdff   : > { %v2260_v33 = vpop.f32.mrb[16].mxu1 }
 0xe00   : > { %v1699_v35 = vpop.f32.mrb[17].mxu1  ;;  %v1709_v38 = vmul.f32 %v2585_v36, %v2260_v33 }
 0xe01   : > { %v1708_v37 = vmul.f32 %v2583_v34, %v1699_v35 }
 0xe03   : > { %2269 = vmatprep.mubr.msk.f32.mxu1 %vm406_vm0, %v1708_v37 }
 0xe04   : > { %2270 = vmatmul.mubr.msk.f32.vlgmr.msra.gmra.mrb[18].mxu1 %vm406_vm0, %v1709_v38  ;;  %v2282_v39 = vpop.f32.mrb[8].mxu0 }
 0xe05   : > { %v1868_v40 = vpop.f32.mrb[9].mxu0 }
 0xed7   : > { %v2271_v41 = vpop.f32.mrb[18].mxu1 }
 0xed8   : > { %v1874_v42 = vadd.f32 %v2282_v39, %v2271_v41  ;;  %v1787_v43 = vpop.f32.mrb[19].mxu1 }
 0xed9   : > { %v1869_v44 = vadd.f32 %v1868_v40, %v1787_v43 }
 0xeda   : > { %v1878_v47 = vadd.f32 %v1874_v42, %v3201_v52 }
 0xedb   : > { %v1877_v46 = vadd.f32 %v1869_v44, %v3193_v59 }
 0xedc   : > { %v1888_v48 = vadd.f32 %v2115_v45, %v1878_v47 }
 0xedd   : > { %v1887_v49 = vadd.f32 %v2115_v45, %v1877_v46 }
 0xede   : > { %v1892_v50 = vsel %vm406_vm0, %v1888_v48, 0.0 }
 0xedf   : > { %1893 = vadd.xlane.f32.xlu0 %v1892_v50  ;;  %v1889_v6 = vsel %vm406_vm0, %v1887_v49, 0.0 }
 0xee0   : > { %1890 = vadd.xlane.f32.xlu1 %v1889_v6 }
 0xf6c   : > { %v1894_v1 = vpop.xlane.xlu0 %1893 }
 0xf6d   : > { %v1896_v53 = vmul.f32 0.03125, %v1894_v1  ;;  %v1891_v54 = vpop.xlane.xlu1 %1890 }
 0xf6e   : > { %v1895_v55 = vmul.f32 0.03125, %v1891_v54 }
 0xf6f   : > { %v1898_v57 = vsub.f32 %v1888_v48, %v1896_v53 }
 0xf70   : > { %v1897_v58 = vsub.f32 %v1887_v49, %v1895_v55 }
 0xf71   : > { %v1900_v52 = vmul.f32 %v1898_v57, %v1898_v57 }
 0xf72   : > { %v1899_v60 = vmul.f32 %v1897_v58, %v1897_v58 }
 0xf73   : > { %v1904_v59 = vsel %vm406_vm0, %v1900_v52, 0.0 }
 0xf74   : > { %v1901_v24 = vsel %vm406_vm0, %v1899_v60, 0.0 }
 0xf75   : > { %1902 = vadd.xlane.f32.xlu1 %v1901_v24 }
 0xf79   : > { %1905 = vadd.xlane.f32.xlu1 %v1904_v59 }
0x1002   : > { %v1903_v51 = vpop.xlane.xlu1 %1902 }
0x1003   : > { %v1907_v61 = vmul.f32 0.03125, %v1903_v51 }
0x1005   : > { %v1909_v63 = vadd.f32 1e-05, %v1907_v61 }
0x1006   : > { %v1906_v2 = vpop.xlane.xlu1 %1905 }
0x1007   : > { %2586 = vrsqrt.f32 %v1909_v63  ;;  %v1908_v3 = vmul.f32 0.03125, %v1906_v2 }
0x1009   : > { %v1910_v4 = vadd.f32 1e-05, %v1908_v3 }
0x100b   : > { %2588 = vrsqrt.f32 %v1910_v4 }
0x1011   : > { %v2587_v5 = vpop.eup %2586 }
0x1012   : > { %v1913_v8 = vmul.f32 %v2587_v5, %v1897_v58 }
0x1014   : > { %v1923_v10 = vmul.f32 %v2117_v7, %v1913_v8 }
0x1015   : > { %v2589_v11 = vpop.eup %2588 }
0x1016   : > { %v1933_v12 = vadd.f32 %v2119_v9, %v1923_v10  ;;  %v1914_v13 = vmul.f32 %v2589_v11, %v1898_v57 }
0x1018   : > { %v1924_v14 = vmul.f32 %v2117_v7, %v1914_v13  ;;  %1935 = vst.msk [vmem:[%s381_s17] sm:$0xff] %vm406_vm0, %v1933_v12 }
0x101a   : > { %v1934_v15 = vadd.f32 %v2119_v9, %v1924_v14 }
0x101c   : > { %1936 = vst.msk [vmem:[%s381_s17 + $0x8] sm:$0xff] %vm406_vm0, %v1934_v15 }
0x101d   : > { %2745 = shalt.err (!%p2742_p13)
}
0x101e   : > { %s2746_s25 = scalar_lea.hbm %s3275_s10, 256  ;;  %s2750_s11 = scalar_lea.hbm %s3359_s19, 512 }
0x101f   : > { %p2747_p0 = scmp.ne.s32.totalorder %s3275_s10, %s2746_s25  ;;  %p2751_p1 = scmp.lt.u32.totalorder %s3275_s10, %s3359_s19 }
0x1020   : > { %p2752_p2 = scmp.lt.u32.totalorder %s2750_s11, %s2746_s25  ;;  %p2754_p8 = scmp.lt.u32.totalorder %s2746_s25, %s3275_s10 }
0x1021   : > { %p2748_p5 = pnand %p2747_p0, %p3017_p6 }
0x1022   : > { %p2753_p4 = por %p2752_p2, %p2751_p1 }
0x1023   : > { %p2749_p11 = pneg %p2748_p5 }
0x1024   : > { %p2755_p10 = por %p2754_p8, %p2753_p4 }
0x1026   : > { %p2756_p12 = pnand %p2755_p10, %p2749_p11 }
0x1028   : > { %2759 = shalt.err (!%p2756_p12)
}
0x1029   : > { %s2822_s15 = smov 128   ;;  %s2823_s22 = smov 8  }
0x102a   : > { %2441 = dma.vmem_to_hbm [thread:$0]  (%p3017_p6), %s3277_s12, 256, %s3275_s10, %s1938_s9, %s2822_s15, %s2822_s15, %s2823_s22  }
0x102b PF: > { %s3360_s23 = sld [smem:[#allocation16_spill]]  ;;  %s3361_s21 = sld [smem:[#allocation17_spill]] }
0x102c   : > { %p3363_p7 = scmp.ge.s32.totalorder %s2806_s30, 2 }
0x1031   : > { %s1966_s8 = sand.u32 1, %s3360_s23   ;;  %p3362_p3 = scmp.ne.s32.totalorder %s3361_s21, 0 }
0x1032   : > { %s1967_s18 = scalar_lea.sflag [#allocation4], %s1966_s8 }
0x1033   : > { %p2461_p9 = pnand %p3363_p7, %p3362_p3 }
0x1035   : > { %2789 = dma.done.wait (!%p2461_p9), %s1967_s18, 256  }
0x1036   : > { %2791 = vsyncadd (!%p2461_p9), %s1967_s18, 4294967040  ;;  %p23_p13 = scmp.ge.s32.totalorder %s3007_s24, 4   ;;  %s3364_s27 = smov %s2798_s28 }
0x1037   : > { %s3365_s28 = smov %s2802_s29  ;;  %s3366_s29 = smov %s3023_s20 }
0x1038   : > { %s3367_s30 = smov %s3007_s24  ;;  %25 = sbr.rel (!%p23_p13) target bundleno = 9 (0x9), region = 121 }
0x103f   :  { %1972 = vsyncpa [#allocation3], 1 }
0x1040   :  { %1974 = vsyncpa [#allocation3 + $0x1], 1 }
0x1041   :  { %1975 = vsyncpa [#allocation6], 1 }
0x1042   :  { %1976 = vsyncpa [#allocation9], 1 }
0x1043   :  { %1977 = vsyncpa [#allocation4], 1 }
0x1044   :  { %1979 = vsyncpa [#allocation4 + $0x1], 1 }

</bundles_post_ra>
